<compile_context>
chip_gen: v7x
topology: tpu7x:2x2x1
jax: 0.10.0
libtpu: 0.0.40
codegen_flags: <defaults>
</compile_context>

<pallas_src>
import functools

import jax
import jax.numpy as jnp
from jax.experimental import pallas as pl
from jax.experimental.pallas import tpu as pltpu


def _round_up(x, m):
    return (x + m - 1) // m * m


def _fused_gcn_kernel(a_ref, x_ref, w_ref, b_ref, o_ref, h_ref, *, tm):
    """Grid is (layer l in [0,3), row-block r).  Scratch h_ref keeps the
    previous layer's full activations resident in VMEM (bf16)."""
    l = pl.program_id(0)
    r = pl.program_id(1)

    a_blk = a_ref[...]        # (TM, N_pad) bf16 row strip of A_hat
    w_blk = w_ref[0]          # (F_pad, F_pad) bf16, weight of layer l
    b_blk = b_ref[0]          # (1, F_pad) f32, bias of layer l

    def layer(h_prev, relu):
        # Aggregate first: (A_blk @ H_prev) @ W  — the shared H_prev @ W is
        # never recomputed per row block; MXU in bf16, f32 accumulation.
        agg = jnp.dot(a_blk, h_prev, preferred_element_type=jnp.float32)
        out = jnp.dot(agg.astype(jnp.bfloat16), w_blk,
                      preferred_element_type=jnp.float32)
        out = out + b_blk                 # bias add in f32
        if relu:
            out = jnp.maximum(out, 0.0)   # ReLU in f32
        return out

    row0 = pl.multiple_of(r * tm, tm)
    rows = pl.ds(row0, tm)

    # Layer 0: read padded X, write slot 0 of the H scratch.
    @pl.when(l == 0)
    def _():
        h_ref[0, rows, :] = layer(x_ref[...], True).astype(h_ref.dtype)

    # Layer 1: read slot 0, write slot 1.
    @pl.when(l == 1)
    def _():
        h_ref[1, rows, :] = layer(h_ref[0], True).astype(h_ref.dtype)

    # Layer 2: read slot 1, write the (only) HBM output, no ReLU.
    # (For l<2 the output buffer is simply not touched; every output block is
    #  overwritten with the correct values during the l==2 pass.)
    @pl.when(l == 2)
    def _():
        o_ref[...] = layer(h_ref[1], False).astype(o_ref.dtype)


def build_normalized_adjacency(edge_index, num_nodes):
    """Dense A_hat = D^{-1/2} (A + I) D^{-1/2} from a (2, E) edge_index.
    Uses scatter-add so duplicate edges accumulate (matches PyG gcn_norm)."""
    src = edge_index[0]
    dst = edge_index[1]
    a = jnp.zeros((num_nodes, num_nodes), jnp.float32)
    # message flows src -> dst; aggregation at dst  =>  A[dst, src] += 1
    a = a.at[dst, src].add(1.0)
    a = a + jnp.eye(num_nodes, dtype=jnp.float32)  # self loops
    deg = jnp.sum(a, axis=1)
    d_inv_sqrt = jnp.where(deg > 0, 1.0 / jnp.sqrt(deg), 0.0)
    return d_inv_sqrt[:, None] * a * d_inv_sqrt[None, :]


def init_params(key, input_dim, hidden_dim, embedding_dim):
    """Deterministic glorot-uniform-style weights and zero biases."""
    dims = [(input_dim, hidden_dim), (hidden_dim, embedding_dim),
            (embedding_dim, input_dim)]
    params = []
    for (fin, fout) in dims:
        key, sub = jax.random.split(key)
        limit = jnp.sqrt(6.0 / (fin + fout))
        w = jax.random.uniform(sub, (fin, fout), jnp.float32, -limit, limit)
        b = jnp.zeros((fout,), jnp.float32)
        params.append((w, b))
    return params


def gnn_net_forward(x, edge_index, params, *, tm=256):
    """Fused 3-layer GCN forward.  x: (N, F_in) f32, edge_index: (2, E) i32."""
    n, input_dim = x.shape
    out_dim = params[-1][0].shape[1]

    # Lane-dense padding: features -> multiple of 128, nodes -> multiple of TM.
    feat_dims = [input_dim] + [w.shape[1] for (w, _) in params]
    f_pad = _round_up(max(feat_dims + [128]), 128)
    n_pad = _round_up(n, max(tm, 128))
    n_blocks = n_pad // tm

    # A_hat: zero-padded, bf16 MXU operand (padded rows/cols are zero so they
    # never contribute to valid rows).
    a_hat = build_normalized_adjacency(edge_index, n)
    a_pad = jnp.zeros((n_pad, n_pad), jnp.float32).at[:n, :n].set(a_hat)
    a_pad = a_pad.astype(jnp.bfloat16)

    # X: zero-padded, bf16 MXU operand.
    x_pad = jnp.zeros((n_pad, f_pad), jnp.float32).at[:n, :input_dim].set(x)
    x_pad = x_pad.astype(jnp.bfloat16)

    # Stack zero-padded weights (bf16) and biases (f32) so the layer grid
    # index selects them via BlockSpec (one DMA per layer).
    w_stack = jnp.zeros((3, f_pad, f_pad), jnp.float32)
    b_stack = jnp.zeros((3, 1, f_pad), jnp.float32)
    for i, (w, b) in enumerate(params):
        fin, fout = w.shape
        w_stack = w_stack.at[i, :fin, :fout].set(w)
        b_stack = b_stack.at[i, 0, :fout].set(b)
    w_stack = w_stack.astype(jnp.bfloat16)

    # Explicit VMEM budget (double-buffered inputs + output + H scratch).
    vmem_needed = (
        2 * tm * n_pad * 2          # A_hat row strip (bf16, double buffered)
        + 2 * n_pad * f_pad * 2     # X (bf16)
        + 2 * f_pad * f_pad * 2     # W block (bf16)
        + 2 * 8 * f_pad * 4         # bias block (f32, sublane-padded)
        + 2 * tm * f_pad * 4        # output block (f32)
        + 2 * n_pad * f_pad * 2     # H scratch (bf16, 2 slots)
    )
    vmem_limit = int(min(64 * 1024 * 1024,
                         max(2 * vmem_needed, 16 * 1024 * 1024)))

    flops = 3 * (2 * n_pad * n_pad * f_pad + 2 * n_pad * f_pad * f_pad)
    bytes_accessed = (3 * n_pad * n_pad * 2 + n_pad * f_pad * 2
                      + 3 * f_pad * f_pad * 2 + 3 * 8 * f_pad * 4
                      + n_pad * f_pad * 4)

    out_pad = pl.pallas_call(
        functools.partial(_fused_gcn_kernel, tm=tm),
        out_shape=jax.ShapeDtypeStruct((n_pad, f_pad), jnp.float32),
        grid_spec=pltpu.PrefetchScalarGridSpec(
            num_scalar_prefetch=0,
            grid=(3, n_blocks),
            in_specs=[
                pl.BlockSpec((tm, n_pad), lambda l, r: (r, 0)),        # A_hat
                pl.BlockSpec((n_pad, f_pad), lambda l, r: (0, 0)),     # X
                pl.BlockSpec((1, f_pad, f_pad), lambda l, r: (l, 0, 0)),  # W_l
                pl.BlockSpec((1, 1, f_pad), lambda l, r: (l, 0, 0)),      # b_l
            ],
            out_specs=pl.BlockSpec((tm, f_pad), lambda l, r: (r, 0)),
            scratch_shapes=[pltpu.VMEM((2, n_pad, f_pad), jnp.bfloat16)],
        ),
        compiler_params=pltpu.CompilerParams(
            dimension_semantics=("arbitrary", "arbitrary"),
            vmem_limit_bytes=vmem_limit,
        ),
        cost_estimate=pl.CostEstimate(
            flops=flops, transcendentals=0, bytes_accessed=bytes_accessed),
    )(a_pad, x_pad, w_stack, b_stack)

    return out_pad[:n, :out_dim]


def _reference_forward(x, edge_index, params):
    """Pure-JAX f32 reference of GNNNet.forward for verification."""
    n = x.shape[0]
    a_hat = build_normalized_adjacency(edge_index, n)
    h = x
    for i, (w, b) in enumerate(params):
        h = a_hat @ (h @ w) + b
        if i < 2:
            h = jnp.maximum(h, 0.0)
    return h


if __name__ == "__main__":
    # Small shapes: 8 nodes, input_dim=4, hidden=32, embedding=16.
    # TODO(synk): for large graphs a sparse/blocked (scalar-prefetch
    # neighbor-list) aggregation would replace the dense O(N^2) A_hat.
    num_nodes = 8
    input_dim = 4
    hidden_dim = 32
    embedding_dim = 16

    key = jax.random.PRNGKey(0)
    key, kx = jax.random.split(key)
    x = jax.random.normal(kx, (num_nodes, input_dim), jnp.float32)

    # Undirected ring graph: edges i <-> (i+1) % N.
    src = jnp.arange(num_nodes, dtype=jnp.int32)
    dst = (src + 1) % num_nodes
    edge_index = jnp.concatenate(
        [jnp.stack([src, dst], axis=0), jnp.stack([dst, src], axis=0)], axis=1
    )  # (2, 2N)

    params = init_params(key, input_dim, hidden_dim, embedding_dim)

    out = gnn_net_forward(x, edge_index, params)
    out = jax.block_until_ready(out)
    assert out.shape == (num_nodes, input_dim)

    # Sanity check against the f32 reference (bf16 MXU operands -> loose tol).
    ref = jax.block_until_ready(_reference_forward(x, edge_index, params))
    assert jnp.allclose(out, ref, atol=5e-2, rtol=5e-2), (
        f"max abs err {float(jnp.max(jnp.abs(out - ref)))}")

    print("KERNEL_OK")
</pallas_src>

<mosaic_0001>
module attributes {stable_mosaic.version = 11 : i64} {
  func.func @_fused_gcn_kernel(%arg0: i32, %arg1: i32, %arg2: memref<256x256xbf16, #tpu.memory_space<vmem>>, %arg3: memref<256x128xbf16, #tpu.memory_space<vmem>>, %arg4: memref<1x128x128xbf16, #tpu.memory_space<vmem>>, %arg5: memref<1x1x128xf32, #tpu.memory_space<vmem>>, %arg6: memref<256x128xf32, #tpu.memory_space<vmem>>, %arg7: memref<2x256x128xbf16, #tpu.memory_space<vmem>>) attributes {dimension_semantics = [#tpu.dimension_semantics<arbitrary>, #tpu.dimension_semantics<arbitrary>], iteration_bounds = array<i64: 3, 1>, scalar_prefetch = 0 : i64, scratch_operands = 1 : i64, tpu.core_type = #tpu.core_type<tc>, window_params = [{transform_indices = @transform_0, window_bounds = array<i64: 256, 256>}, {pipeline_mode = #tpu.pipeline_mode<synchronous>, transform_indices = @transform_1, window_bounds = array<i64: 256, 128>}, {transform_indices = @transform_2, window_bounds = array<i64: 1, 128, 128>}, {transform_indices = @transform_3, window_bounds = array<i64: 1, 1, 128>}, {transform_indices = @transform_4, window_bounds = array<i64: 256, 128>}]} {
    %c0 = arith.constant 0 : index
    %c0_0 = arith.constant 0 : index
    %0 = vector.load %arg2[%c0, %c0_0] : memref<256x256xbf16, #tpu.memory_space<vmem>>, vector<256x256xbf16>
    %c0_1 = arith.constant 0 : index
    %c0_2 = arith.constant 0 : index
    %c0_3 = arith.constant 0 : index
    %1 = vector.load %arg4[%c0_1, %c0_2, %c0_3] : memref<1x128x128xbf16, #tpu.memory_space<vmem>>, vector<1x128x128xbf16>
    %2 = vector.shape_cast %1 : vector<1x128x128xbf16> to vector<128x128xbf16>
    %c0_4 = arith.constant 0 : index
    %c0_5 = arith.constant 0 : index
    %c0_6 = arith.constant 0 : index
    %3 = vector.load %arg5[%c0_4, %c0_5, %c0_6] : memref<1x1x128xf32, #tpu.memory_space<vmem>>, vector<1x1x128xf32>
    %4 = vector.shape_cast %3 : vector<1x1x128xf32> to vector<1x128xf32>
    %c256_i32 = arith.constant 256 : i32
    %5 = arith.muli %arg1, %c256_i32 : i32
    %6 = tpu.assume_multiple %5, 256 : i32
    %c0_i32 = arith.constant 0 : i32
    %7 = arith.cmpi eq, %arg0, %c0_i32 : i32
    %8 = arith.extui %7 : i1 to i32
    %c0_i32_7 = arith.constant 0 : i32
    %9 = arith.cmpi ne, %8, %c0_i32_7 : i32
    scf.if %9 {
      %c0_10 = arith.constant 0 : index
      %c0_11 = arith.constant 0 : index
      %16 = vector.load %arg3[%c0_10, %c0_11] : memref<256x128xbf16, #tpu.memory_space<vmem>>, vector<256x128xbf16>
      %cst = arith.constant dense<0.000000e+00> : vector<256x128xf32>
      %17 = tpu.matmul %0, %16, %cst {dimension_numbers = #tpu.dot_dimension_numbers<[1], [0], [0], [1], [0, 0, 1, 1], [], []>} : vector<256x256xbf16>, vector<256x128xbf16>, vector<256x128xf32> -> vector<256x128xf32>
      %18 = arith.truncf %17 : vector<256x128xf32> to vector<256x128xbf16>
      %cst_12 = arith.constant dense<0.000000e+00> : vector<256x128xf32>
      %19 = tpu.matmul %18, %2, %cst_12 {dimension_numbers = #tpu.dot_dimension_numbers<[1], [0], [0], [1], [0, 0, 1, 1], [], []>} : vector<256x128xbf16>, vector<128x128xbf16>, vector<256x128xf32> -> vector<256x128xf32>
      %20 = vector.broadcast %4 : vector<1x128xf32> to vector<256x128xf32>
      %21 = arith.addf %19, %20 : vector<256x128xf32>
      %cst_13 = arith.constant 0.000000e+00 : f32
      %22 = vector.broadcast %cst_13 : f32 to vector<256x128xf32>
      %23 = arith.maximumf %21, %22 : vector<256x128xf32>
      %24 = arith.truncf %23 : vector<256x128xf32> to vector<256x128xbf16>
      %c0_14 = arith.constant 0 : index
      %25 = arith.index_cast %6 : i32 to index
      %c0_15 = arith.constant 0 : index
      %26 = vector.load %arg7[%c0_14, %25, %c0_15] : memref<2x256x128xbf16, #tpu.memory_space<vmem>>, vector<1x256x128xbf16>
      %27 = vector.shape_cast %26 : vector<1x256x128xbf16> to vector<256x128xbf16>
      %28 = vector.shape_cast %24 : vector<256x128xbf16> to vector<1x256x128xbf16>
      tpu.vector_store %arg7[%c0_14, %25, %c0_15], %28 {strides = array<i32>} : memref<2x256x128xbf16, #tpu.memory_space<vmem>>, vector<1x256x128xbf16>,
    } else {
    }
    %c1_i32 = arith.constant 1 : i32
    %10 = arith.cmpi eq, %arg0, %c1_i32 : i32
    %11 = arith.extui %10 : i1 to i32
    %c0_i32_8 = arith.constant 0 : i32
    %12 = arith.cmpi ne, %11, %c0_i32_8 : i32
    scf.if %12 {
      %c0_10 = arith.constant 0 : index
      %c0_11 = arith.constant 0 : index
      %c0_12 = arith.constant 0 : index
      %16 = vector.load %arg7[%c0_10, %c0_11, %c0_12] : memref<2x256x128xbf16, #tpu.memory_space<vmem>>, vector<1x256x128xbf16>
      %17 = vector.shape_cast %16 : vector<1x256x128xbf16> to vector<256x128xbf16>
      %cst = arith.constant dense<0.000000e+00> : vector<256x128xf32>
      %18 = tpu.matmul %0, %17, %cst {dimension_numbers = #tpu.dot_dimension_numbers<[1], [0], [0], [1], [0, 0, 1, 1], [], []>} : vector<256x256xbf16>, vector<256x128xbf16>, vector<256x128xf32> -> vector<256x128xf32>
      %19 = arith.truncf %18 : vector<256x128xf32> to vector<256x128xbf16>
      %cst_13 = arith.constant dense<0.000000e+00> : vector<256x128xf32>
      %20 = tpu.matmul %19, %2, %cst_13 {dimension_numbers = #tpu.dot_dimension_numbers<[1], [0], [0], [1], [0, 0, 1, 1], [], []>} : vector<256x128xbf16>, vector<128x128xbf16>, vector<256x128xf32> -> vector<256x128xf32>
      %21 = vector.broadcast %4 : vector<1x128xf32> to vector<256x128xf32>
      %22 = arith.addf %20, %21 : vector<256x128xf32>
      %cst_14 = arith.constant 0.000000e+00 : f32
      %23 = vector.broadcast %cst_14 : f32 to vector<256x128xf32>
      %24 = arith.maximumf %22, %23 : vector<256x128xf32>
      %25 = arith.truncf %24 : vector<256x128xf32> to vector<256x128xbf16>
      %c1 = arith.constant 1 : index
      %26 = arith.index_cast %6 : i32 to index
      %c0_15 = arith.constant 0 : index
      %27 = vector.load %arg7[%c1, %26, %c0_15] : memref<2x256x128xbf16, #tpu.memory_space<vmem>>, vector<1x256x128xbf16>
      %28 = vector.shape_cast %27 : vector<1x256x128xbf16> to vector<256x128xbf16>
      %29 = vector.shape_cast %25 : vector<256x128xbf16> to vector<1x256x128xbf16>
      tpu.vector_store %arg7[%c1, %26, %c0_15], %29 {strides = array<i32>} : memref<2x256x128xbf16, #tpu.memory_space<vmem>>, vector<1x256x128xbf16>,
    } else {
    }
    %c2_i32 = arith.constant 2 : i32
    %13 = arith.cmpi eq, %arg0, %c2_i32 : i32
    %14 = arith.extui %13 : i1 to i32
    %c0_i32_9 = arith.constant 0 : i32
    %15 = arith.cmpi ne, %14, %c0_i32_9 : i32
    scf.if %15 {
      %c1 = arith.constant 1 : index
      %c0_10 = arith.constant 0 : index
      %c0_11 = arith.constant 0 : index
      %16 = vector.load %arg7[%c1, %c0_10, %c0_11] : memref<2x256x128xbf16, #tpu.memory_space<vmem>>, vector<1x256x128xbf16>
      %17 = vector.shape_cast %16 : vector<1x256x128xbf16> to vector<256x128xbf16>
      %cst = arith.constant dense<0.000000e+00> : vector<256x128xf32>
      %18 = tpu.matmul %0, %17, %cst {dimension_numbers = #tpu.dot_dimension_numbers<[1], [0], [0], [1], [0, 0, 1, 1], [], []>} : vector<256x256xbf16>, vector<256x128xbf16>, vector<256x128xf32> -> vector<256x128xf32>
      %19 = arith.truncf %18 : vector<256x128xf32> to vector<256x128xbf16>
      %cst_12 = arith.constant dense<0.000000e+00> : vector<256x128xf32>
      %20 = tpu.matmul %19, %2, %cst_12 {dimension_numbers = #tpu.dot_dimension_numbers<[1], [0], [0], [1], [0, 0, 1, 1], [], []>} : vector<256x128xbf16>, vector<128x128xbf16>, vector<256x128xf32> -> vector<256x128xf32>
      %21 = vector.broadcast %4 : vector<1x128xf32> to vector<256x128xf32>
      %22 = arith.addf %20, %21 : vector<256x128xf32>
      %c0_13 = arith.constant 0 : index
      %c0_14 = arith.constant 0 : index
      %23 = vector.load %arg6[%c0_13, %c0_14] : memref<256x128xf32, #tpu.memory_space<vmem>>, vector<256x128xf32>
      tpu.vector_store %arg6[%c0_13, %c0_14], %22 {strides = array<i32>} : memref<256x128xf32, #tpu.memory_space<vmem>>, vector<256x128xf32>,
    } else {
    }
    return
  }
  func.func @transform_0(%arg0: i32, %arg1: i32) -> (i32, i32) {
    %c0_i32 = arith.constant 0 : i32
    %c0_i32_0 = arith.constant 0 : i32
    return %arg1, %c0_i32 : i32, i32
  }
  func.func @transform_1(%arg0: i32, %arg1: i32) -> (i32, i32) {
    %c0_i32 = arith.constant 0 : i32
    %c0_i32_0 = arith.constant 0 : i32
    %c0_i32_1 = arith.constant 0 : i32
    return %c0_i32, %c0_i32_0 : i32, i32
  }
  func.func @transform_2(%arg0: i32, %arg1: i32) -> (i32, i32, i32) {
    %c0_i32 = arith.constant 0 : i32
    %c0_i32_0 = arith.constant 0 : i32
    %c0_i32_1 = arith.constant 0 : i32
    return %arg0, %c0_i32, %c0_i32_0 : i32, i32, i32
  }
  func.func @transform_3(%arg0: i32, %arg1: i32) -> (i32, i32, i32) {
    %c0_i32 = arith.constant 0 : i32
    %c0_i32_0 = arith.constant 0 : i32
    %c0_i32_1 = arith.constant 0 : i32
    return %arg0, %c0_i32, %c0_i32_0 : i32, i32, i32
  }
  func.func @transform_4(%arg0: i32, %arg1: i32) -> (i32, i32) {
    %c0_i32 = arith.constant 0 : i32
    %c0_i32_0 = arith.constant 0 : i32
    return %arg1, %c0_i32 : i32, i32
  }
}

</mosaic_0001>

<bundles_post_ra>
// kernel: tpu_custom_call.1
= control target key start
LH: loop header
LB: loop body
LE: loop exit
PB: predicated region body
PF: predicated region fallthrough
CT: control target
= control target key end

     0   :  { %9 = vsyncpa [#allocation4], 0  ;;  %s4316_s0 = inlined_call_operand.hbm [shape: bf16[256,256], index: 0, kind: input, shape index: {}]   ;;  %s4317_s1 = inlined_call_operand.hbm [shape: bf16[256,128], index: 1, kind: input, shape index: {}]   ;;  %s4318_s2 = inlined_call_operand.hbm [shape: bf16[3,128,128], index: 2, kind: input, shape index: {}]   ;;  %s4319_s3 = inlined_call_operand.vmem [shape: f32[3,1,128], index: 3, kind: input, shape index: {}]   ;;  %s4320_s4 = inlined_call_operand.hbm [shape: f32[256,128], index: 4, kind: output, shape index: {}]  }
   0x1   :  { %10 = vsyncpa [#allocation7], 0 }
   0x2   :  { %11 = vsyncpa [#allocation5], 0  ;;  %s3518_s15 = smov 0   ;;  %s3520_s16 = smov 0  }
   0x3   :  { %s3522_s17 = smov 0   ;;  %s3524_s18 = smov 0  }
   0x4   :  { %s3526_s19 = smov 0   ;;  %s3528_s20 = smov 0  }
   0x5 LB: > { %s3547_s21 = sadd.s32 4294967295, %s3481_s20   ;;  %p90_p0 = scmp.ne.s32.totalorder %s3469_s17, %s3465_s16  ;;  %s3481_s20 = sphi %s3528_s20, %s17_s20   ;;  %s3477_s19 = sphi %s3526_s19, %s4411_s19   ;;  %s3473_s18 = sphi %s3524_s18, %s4410_s18   ;;  %s3469_s17 = sphi %s3522_s17, %s4409_s17   ;;  %s3465_s16 = sphi %s3520_s16, %s4408_s16   ;;  %s3461_s15 = sphi %s3518_s15, %s4407_s15  }
   0x6   : > { %p91_p1 = scmp.eq.s32.totalorder %s3481_s20, 0  ;;  %p96_p2 = scmp.ne.s32.totalorder %s3465_s16, %s3461_s15 }
   0x7   : > { %p4321_p3 = scmp.eq.s32.totalorder %s3547_s21, 0  ;;  %p2431_p4 = scmp.ge.s32.totalorder %s3481_s20, 1 }
   0x8   : > { %p92_p5 = por %p91_p1, %p90_p0  ;;  %p159_p6 = scmp.lt.s32.totalorder %s3481_s20, 4 }
   0x9   : > { %p3558_p7 = por %p4321_p3, %p96_p2  ;;  %s3483_s24 = smov [#allocation3]  }
   0xa   : > { %p3562_p8 = pnand %p2431_p4, %p159_p6  ;;  %s175_s25 = sshll.u32 %s3483_s24, 4  ;;  %s176_s25 = int_to_ptr.vmem [resolvable:$true] %s175_s25 }
   0xb   : > { %s4348_s22 = scalar_select %p3558_p7, 1, 0 }
   0xc   : > { %s4349_s23 = scalar_select %p3562_p8, 1, 0 }
   0xd   : > { %p3216_p9 = pneg %p3562_p8  ;;  %p3229_p11 = scmp.lt.s32.totalorder %s3481_s20, 3 }
   0xe   : > { %s3307_s30 = scalar_lea.hbm %s4316_s0, 4096 }
   0xf   : > { %p3570_p10 = pnand %p3216_p9, %p4321_p3  ;;  %p3575_p12 = pnand %p3229_p11, %p92_p5 }
  0x10   : > { %p3308_p13 = scmp.ne.s32.totalorder %s4316_s0, %s3307_s30  ;;  %p3314_p4 = scmp.lt.u32.totalorder %s3307_s30, %s4316_s0 }
  0x11   : > { %s4351_s27 = scalar_select %p3575_p12, 1, 0 }
  0x12   : > { %p3309_p0 = pneg %p3570_p10 }
  0x14   : > { %p3310_p1 = pnand %p3309_p0, %p3308_p13 }
  0x16   : > { %p3311_p2 = pneg %p3310_p1 }
  0x18   : > { %p3316_p5 = pnand %p3314_p4, %p3311_p2 }
  0x1a   : > { %3319 = shalt.err (!%p3316_p5)
}
  0x1b   : > { %s3320_s9 = scalar_lea.vmem %s176_s25, 4096  ;;  %p3328_p3 = scmp.lt.s32.totalorder %s176_s25, %s176_s25 }
  0x1c   : > { %p3321_p6 = scmp.ne.s32.totalorder %s176_s25, %s3320_s9  ;;  %p3329_p7 = scmp.lt.s32.totalorder %s3320_s9, %s3320_s9 }
  0x1e   : > { %p3323_p9 = pnand %p3321_p6, %p3309_p0  ;;  %p3330_p8 = por %p3329_p7, %p3328_p3 }
  0x20   : > { %p3324_p11 = pneg %p3323_p9 }
  0x22   : > { %p3331_p12 = pnand %p3330_p8, %p3324_p11 }
  0x24   : > { %3334 = shalt.err (!%p3331_p12)
}
  0x25   : > { %s3484_s10 = smov 128   ;;  %s3485_s11 = smov 8  }
  0x26   : > { %3219 = dma.hbm_to_vmem [thread:$0]  (!%p3570_p10), %s4316_s0, 4096, %s176_s25, [#allocation4], %s3484_s10, %s3484_s10, %s3485_s11  }
  0x27   : > { %s3486_s14 = smov [#allocation6]   ;;  %s3335_s29 = scalar_lea.hbm %s4317_s1, 2048 }
  0x28   : > { %s188_s15 = sshll.u32 %s3486_s14, 4  ;;  %p3336_p3 = scmp.ne.s32.totalorder %s4317_s1, %s3335_s29  ;;  %s189_s15 = int_to_ptr.vmem [resolvable:$true] %s188_s15 }
  0x29   : > { %p3342_p12 = scmp.lt.u32.totalorder %s3335_s29, %s4317_s1 }
  0x2a   : > { %p3338_p7 = pnand %p3336_p3, %p3309_p0 }
  0x2c   : > { %p3339_p8 = pneg %p3338_p7 }
  0x2e   : > { %p3344_p13 = pnand %p3342_p12, %p3339_p8 }
  0x30   : > { %3347 = shalt.err (!%p3344_p13)
}
  0x31   : > { %s3348_s25 = scalar_lea.vmem %s189_s15, 2048  ;;  %p3356_p5 = scmp.lt.s32.totalorder %s189_s15, %s189_s15 }
  0x32   : > { %p3349_p1 = scmp.ne.s32.totalorder %s189_s15, %s3348_s25  ;;  %p3357_p6 = scmp.lt.s32.totalorder %s3348_s25, %s3348_s25 }
  0x34   : > { %p3351_p2 = pnand %p3349_p1, %p3309_p0  ;;  %p3358_p9 = por %p3357_p6, %p3356_p5 }
  0x36   : > { %p3352_p4 = pneg %p3351_p2 }
  0x38   : > { %p3359_p11 = pnand %p3358_p9, %p3352_p4 }
  0x3a   : > { %3362 = shalt.err (!%p3359_p11)
}
  0x3b   : > { %s3487_s8 = smov 64   ;;  %s3488_s9 = smov 4  }
  0x3c   : > { %3222 = dma.hbm_to_vmem [thread:$0]  (!%p3570_p10), %s4317_s1, 2048, %s189_s15, [#allocation7], %s3487_s8, %s3487_s8, %s3488_s9  }
  0x3d   : > { %s83_s12 = sadd.s32 1, %s3469_s17  ;;  %s202_s13 = sand.u32 1, %s3481_s20  }
  0x3e   : > { %s29_s14 = sadd.s32 1, %s3477_s19  ;;  %s204_s24 = sand.u32 1, %s3469_s17  }
  0x3f   : > { %p31_p0 = scmp.ge.s32.totalorder %s29_s14, 3  ;;  %s2435_s28 = sshll.u32 %s204_s24, 6 }
  0x40   : > { %s2601_s29 = sshll.u32 %s3477_s19, 10  ;;  %s206_s6 = scalar_lea.vmem [#allocation8], %s2435_s28 }
  0x41   : > { %s4413_s14 = smov (%p31_p0, %s29_s14), 0  ;;  %s3634_s5 = scalar_lea.hbm %s4318_s2, %s2601_s29 }
  0x42   : > { %s80_s15 = ssub.s32 %s3477_s19, %s4413_s14  ;;  %s213_s7 = sshll.u32 %s206_s6, 4  ;;  %s3642_s7 = int_to_ptr.vmem [resolvable:$true] %s213_s7 }
  0x43   : > { %p3638_p10 = scmp.eq.s32.totalorder %s80_s15, 0  ;;  %s3644_s10 = scalar_lea.sflag [#allocation4], %s202_s13 }
  0x44   : > { %s3363_s11 = scalar_lea.hbm %s3634_s5, 1024  ;;  %p4353_p7 = scmp.ne.s32.totalorder %s4351_s27, 0 }
  0x45   : > { %p3364_p3 = scmp.ne.s32.totalorder %s3634_s5, %s3363_s11  ;;  %s3368_s28 = scalar_lea.hbm %s4318_s2, 3072 }
  0x46   : > { %p3365_p8 = pneg %p4353_p7  ;;  %p3369_p1 = scmp.lt.u32.totalorder %s3634_s5, %s4318_s2 }
  0x47   : > { %p3370_p2 = scmp.lt.u32.totalorder %s3368_s28, %s3363_s11  ;;  %p3372_p5 = scmp.lt.u32.totalorder %s3363_s11, %s3634_s5 }
  0x48   : > { %p3366_p12 = pnand %p3365_p8, %p3364_p3 }
  0x49   : > { %p3371_p4 = por %p3370_p2, %p3369_p1 }
  0x4a   : > { %p3367_p13 = pneg %p3366_p12 }
  0x4b   : > { %p3373_p6 = por %p3372_p5, %p3371_p4 }
  0x4d   : > { %p3374_p9 = pnand %p3373_p6, %p3367_p13 }
  0x4f   : > { %3377 = shalt.err (!%p3374_p9)
}
  0x50   : > { %s3378_s13 = scalar_lea.vmem %s3642_s7, 1024  ;;  %s3489_s15 = smov [#allocation8]  }
  0x51   : > { %p3379_p11 = scmp.ne.s32.totalorder %s3642_s7, %s3378_s13  ;;  %s3383_s6 = sshll.u32 %s3489_s15, 4  ;;  %s3384_s6 = int_to_ptr.vmem [resolvable:$false] %s3383_s6 }
  0x52   : > { %s3385_s24 = scalar_lea.vmem %s3384_s6, 2048  ;;  %p3386_p12 = scmp.lt.s32.totalorder %s3642_s7, %s3384_s6 }
  0x53   : > { %p3381_p0 = pnand %p3379_p11, %p3365_p8  ;;  %p3387_p1 = scmp.lt.s32.totalorder %s3385_s24, %s3378_s13 }
  0x55   : > { %p3382_p3 = pneg %p3381_p0  ;;  %p3388_p2 = por %p3387_p1, %p3386_p12 }
  0x57   : > { %p3389_p4 = pnand %p3388_p2, %p3382_p3 }
  0x59   : > { %3392 = shalt.err (!%p3389_p4)
}
  0x5a   : > { %3226 = dma.hbm_to_vmem [thread:$0]  (!%p4353_p7), %s3634_s5, 1024, %s3642_s7, %s3644_s10, %s3487_s8, %s3487_s8, %s3488_s9  }
  0x5b   : > { %s3680_s11 = scalar_select %p3638_p10, %s3469_s17, %s83_s12  }
  0x5c   : > { %p4354_p8 = scmp.ne.s32.totalorder %s4349_s23, 0 }
  0x5e   : > { %231 = sbr.rel (%p4354_p8) target bundleno = 1890 (0x762), region = 36 }
  0x65   : > { %p4355_p13 = scmp.eq.s32.totalorder %s3547_s21, 0 }
  0x67   : > { %3444 = dma.done.wait (%p4355_p13), [#allocation4], 4096   ;;  %p4356_p5 = pmov %p4355_p13 }
  0x69   : > { %3446 = vsyncadd (%p4356_p5), [#allocation4], 4294963200  ;;  %p4357_p6 = pmov %p4356_p5 }
  0x6a   : > { %p4358_p9 = pmov %p4356_p5 }
  0x6b   : > { %3448 = dma.done.wait (%p4357_p6), [#allocation7], 2048  }
  0x6c   : > { %3450 = vsyncadd (%p4358_p9), [#allocation7], 4294965248  ;;  %s241_s27 = sand.u32 1, %s3547_s21   ;;  %s243_s8 = sand.u32 1, %s3465_s16  }
  0x6d   : > { %s2441_s9 = sshll.u32 %s243_s8, 6  ;;  %s242_s23 = scalar_lea.sflag [#allocation4], %s241_s27 }
  0x6e   : > { %s3694_s12 = scalar_lea.vmem [#allocation8], %s2441_s9  ;;  %p4359_p10 = scmp.ne.s32.totalorder %s4348_s22, 0 }
  0x70   : > { %3452 = dma.done.wait (%p4359_p10), %s242_s23, 1024  }
  0x71   : > { %3454 = vsyncadd (%p4359_p10), %s242_s23, 4294966272  ;;  %v3700_v0 = vld [vmem:[#allocation3] sm:$0xff]  ;;  %v3702_v1 = vld [vmem:[#allocation3 + $0x8] sm:$0xff]  ;;  %p269_p7 = scmp.lt.s32.totalorder %s3473_s18, 2  ;;  %p2442_p11 = scmp.ne.s32.totalorder %s3473_s18, 0 }
  0x72   : > { %v3704_v2 = vld [vmem:[#allocation3 + $0x10] sm:$0xff]  ;;  %v3706_v3 = vld [vmem:[#allocation3 + $0x18] sm:$0xff]  ;;  %v3708_v4 = vld [vmem:[#allocation3 + $0x20] sm:$0xff]  ;;  %v2444_v50 = vcombine.high (!%p2442_p11), %v3700_v0, %v3702_v1 }
  0x73   : > { %v3710_v5 = vld [vmem:[#allocation3 + $0x28] sm:$0xff]  ;;  %v3712_v6 = vld [vmem:[#allocation3 + $0x30] sm:$0xff]  ;;  %v3714_v7 = vld [vmem:[#allocation3 + $0x38] sm:$0xff]  ;;  %s270_s22 = scalar_select %p269_p7, %s3473_s18, 2 }
  0x74   : > { %v3716_v8 = vld [vmem:[#allocation3 + $0x40] sm:$0xff]  ;;  %v3718_v9 = vld [vmem:[#allocation3 + $0x48] sm:$0xff]  ;;  %v3720_v10 = vld [vmem:[#allocation3 + $0x50] sm:$0xff]  ;;  %648 = vmatprep.mubr.bf16.mxu0 (!%p2442_p11), %v2444_v50 }
  0x75   : > { %v3722_v11 = vld [vmem:[#allocation3 + $0x58] sm:$0xff]  ;;  %v3724_v12 = vld [vmem:[#allocation3 + $0x60] sm:$0xff]  ;;  %v3726_v13 = vld [vmem:[#allocation3 + $0x68] sm:$0xff]  ;;  %s271_s25 = scalar_lea.vmem %s4319_s3, %s270_s22 }
  0x76   : > { %v3728_v14 = vld [vmem:[#allocation3 + $0x70] sm:$0xff]  ;;  %v3731_v15 = vld [vmem:[#allocation3 + $0x78] sm:$0xff]  ;;  %v3733_v16 = vld [vmem:[#allocation3 + $0x80] sm:$0xff] }
  0x77   : > { %v3735_v17 = vld [vmem:[#allocation3 + $0x88] sm:$0xff]  ;;  %v3737_v18 = vld [vmem:[#allocation3 + $0x90] sm:$0xff]  ;;  %v3739_v19 = vld [vmem:[#allocation3 + $0x98] sm:$0xff] }
  0x78   : > { %4360 = vst [vmem:[#allocation14_spill] sm:$0xff] %v3737_v18  ;;  %v3741_v20 = vld [vmem:[#allocation3 + $0xa0] sm:$0xff]  ;;  %v3743_v21 = vld [vmem:[#allocation3 + $0xa8] sm:$0xff]  ;;  %v3745_v22 = vld [vmem:[#allocation3 + $0xb0] sm:$0xff] }
  0x79   : > { %4361 = vst [vmem:[#allocation15_spill] sm:$0xff] %v3741_v20  ;;  %4362 = vst [vmem:[#allocation16_spill] sm:$0xff] %v3743_v21  ;;  %v3747_v23 = vld [vmem:[#allocation3 + $0xb8] sm:$0xff]  ;;  %v3749_v24 = vld [vmem:[#allocation3 + $0xc0] sm:$0xff] }
  0x7a   : > { %4363 = vst [vmem:[#allocation17_spill] sm:$0xff] %v3745_v22  ;;  %4364 = vst [vmem:[#allocation18_spill] sm:$0xff] %v3747_v23  ;;  %v3751_v25 = vld [vmem:[#allocation3 + $0xc8] sm:$0xff]  ;;  %v3753_v26 = vld [vmem:[#allocation3 + $0xd0] sm:$0xff] }
  0x7b   : > { %v3756_v27 = vld [vmem:[#allocation3 + $0xd8] sm:$0xff]  ;;  %v3758_v28 = vld [vmem:[#allocation3 + $0xe0] sm:$0xff]  ;;  %v3760_v29 = vld [vmem:[#allocation3 + $0xe8] sm:$0xff]  ;;  %v2468_v55 = vcombine.high (!%p2442_p11), %v3749_v24, %v3751_v25 }
  0x7c   : > { %v3762_v30 = vld [vmem:[#allocation3 + $0xf0] sm:$0xff]  ;;  %v3764_v31 = vld [vmem:[#allocation3 + $0xf8] sm:$0xff]  ;;  %v3767_v32 = vld [vmem:[%s3694_s12] sm:$0xf] }
  0x7d   : > { %v3770_v33 = vld [vmem:[%s3694_s12 + $0x4] sm:$0xf]  ;;  %v3773_v34 = vld [vmem:[%s3694_s12 + $0x8] sm:$0xf]  ;;  %v3776_v35 = vld [vmem:[%s3694_s12 + $0xc] sm:$0xf]  ;;  %744 = vmatprep.mubr.bf16.mxu1 (!%p2442_p11), %v2468_v55  ;;  %v2467_v55 = vcombine.low (!%p2442_p11), %v3749_v24, %v3751_v25 }
  0x7e   : > { %v3779_v36 = vld [vmem:[%s3694_s12 + $0x10] sm:$0xf]  ;;  %v3782_v37 = vld [vmem:[%s3694_s12 + $0x14] sm:$0xf]  ;;  %v3785_v38 = vld [vmem:[%s3694_s12 + $0x18] sm:$0xf] }
  0x7f   : > { %v3791_v39 = vld [vmem:[%s3694_s12 + $0x1c] sm:$0xf]  ;;  %v3794_v40 = vld [vmem:[%s3694_s12 + $0x20] sm:$0xf]  ;;  %v3797_v41 = vld [vmem:[%s3694_s12 + $0x24] sm:$0xf] }
  0x80   : > { %4365 = vst [vmem:[#allocation19_spill] sm:$0xff] %v3794_v40  ;;  %4366 = vst [vmem:[#allocation20_spill] sm:$0xff] %v3797_v41  ;;  %v3800_v42 = vld [vmem:[%s3694_s12 + $0x28] sm:$0xf]  ;;  %v3803_v43 = vld [vmem:[%s3694_s12 + $0x2c] sm:$0xf] }
  0x81   : > { %4367 = vst [vmem:[#allocation21_spill] sm:$0xff] %v3800_v42  ;;  %4368 = vst [vmem:[#allocation22_spill] sm:$0xff] %v3803_v43  ;;  %v3806_v44 = vld [vmem:[%s3694_s12 + $0x30] sm:$0xf]  ;;  %v3809_v45 = vld [vmem:[%s3694_s12 + $0x34] sm:$0xf] }
  0x82   : > { %4369 = vst [vmem:[#allocation23_spill] sm:$0xff] %v3806_v44  ;;  %4370 = vst [vmem:[#allocation24_spill] sm:$0xff] %v3809_v45  ;;  %v3812_v46 = vld [vmem:[%s3694_s12 + $0x38] sm:$0xf]  ;;  %v3815_v47 = vld [vmem:[%s3694_s12 + $0x3c] sm:$0xf] }
  0x83   : > { %4371 = vst [vmem:[#allocation25_spill] sm:$0xff] %v3812_v46  ;;  %4372 = vst [vmem:[#allocation26_spill] sm:$0xff] %v3815_v47  ;;  %v3817_v48 = vld [vmem:[%s271_s25] sm:$0x1]  ;;  %327 = sbr.rel (%p2442_p11) target bundleno = 710 (0x2c6), region = 52  ;;  %v3293_v52 = vld [vmem:[#allocation6 + $0x48] sm:$0xff] (!%p2442_p11)  }
  0x84   : > { %v3291_v49 = vld [vmem:[#allocation6 + $0x40] sm:$0xff] (!%p2442_p11)   ;;  %v3294_v53 = vld [vmem:[#allocation6 + $0x8] sm:$0xff] (!%p2442_p11)   ;;  %v3295_v54 = vld [vmem:[#allocation6 + $0x50] sm:$0xff] (!%p2442_p11)  }
  0x85   : > { %v3292_v51 = vld [vmem:[#allocation6] sm:$0xff] (!%p2442_p11)   ;;  %2602 = vmatprep.subr.bf16.mxu0 (!%p2442_p11), %v3291_v49  ;;  %3154 = vmatprep.subr.bf16.mxu1 (!%p2442_p11), %v3291_v49  ;;  %v3296_v56 = vld [vmem:[#allocation6 + $0x10] sm:$0xff] (!%p2442_p11)   ;;  %v3297_v57 = vld [vmem:[#allocation6 + $0x58] sm:$0xff] (!%p2442_p11)  }
  0x86   : > { %2603 = vmatpush3.bf16.msra.mxu0 (!%p2442_p11), %v3292_v51  ;;  %3162 = vmatpush3.bf16.msra.mxu1 (!%p2442_p11), %v3292_v51  ;;  %v3298_v58 = vld [vmem:[#allocation6 + $0x18] sm:$0xff] (!%p2442_p11)   ;;  %v3299_v59 = vld [vmem:[#allocation6 + $0x60] sm:$0xff] (!%p2442_p11)   ;;  %v3301_v61 = vld [vmem:[#allocation6 + $0x68] sm:$0xff] (!%p2442_p11)  }
  0x87   : > { %2604 = vmatprep.subr.bf16.mxu0 (!%p2442_p11), %v3293_v52  ;;  %3155 = vmatprep.subr.bf16.mxu1 (!%p2442_p11), %v3293_v52  ;;  %v3300_v60 = vld [vmem:[#allocation6 + $0x20] sm:$0xff] (!%p2442_p11)   ;;  %v3302_v62 = vld [vmem:[#allocation6 + $0x28] sm:$0xff] (!%p2442_p11)   ;;  %v3303_v63 = vld [vmem:[#allocation6 + $0x70] sm:$0xff] (!%p2442_p11)   ;;  %v2491_v52 = vcombine.low (!%p2442_p11), %v3767_v32, %v3770_v33 }
  0x88   : > { %v3304_v49 = vld [vmem:[#allocation6 + $0x30] sm:$0xff] (!%p2442_p11)   ;;  %v3305_v50 = vld [vmem:[#allocation6 + $0x78] sm:$0xff] (!%p2442_p11)  }
  0x89   : > { %v3306_v51 = vld [vmem:[#allocation6 + $0x38] sm:$0xff] (!%p2442_p11)  }
  0x8a   : > { %2605 = vmatpush3.bf16.msra.mxu0 %v3294_v53  ;;  %3163 = vmatpush3.bf16.msra.mxu1 %v3294_v53  ;;  %v2443_v53 = vcombine.low %v3700_v0, %v3702_v1 }
  0x8b   : > { %2606 = vmatprep.subr.bf16.mxu0 %v3295_v54  ;;  %3156 = vmatprep.subr.bf16.mxu1 %v3295_v54  ;;  %v2446_v54 = vcombine.high %v3704_v2, %v3706_v3 }
  0x8e   : > { %2607 = vmatpush3.bf16.msra.mxu0 %v3296_v56  ;;  %3164 = vmatpush3.bf16.msra.mxu1 %v3296_v56  ;;  %v2470_v56 = vcombine.high %v3753_v26, %v3756_v27 }
  0x8f   : > { %2608 = vmatprep.subr.bf16.mxu0 %v3297_v57  ;;  %3157 = vmatprep.subr.bf16.mxu1 %v3297_v57  ;;  %v2492_v57 = vcombine.low %v3773_v34, %v3776_v35 }
  0x92   : > { %2609 = vmatpush3.bf16.msra.mxu0 %v3298_v58  ;;  %3165 = vmatpush3.bf16.msra.mxu1 %v3298_v58  ;;  %v2493_v58 = vcombine.low %v3779_v36, %v3782_v37 }
  0x93   : > { %2610 = vmatprep.subr.bf16.mxu0 %v3299_v59  ;;  %3158 = vmatprep.subr.bf16.mxu1 %v3299_v59  ;;  %v2445_v59 = vcombine.low %v3704_v2, %v3706_v3 }
  0x96   : > { %2611 = vmatpush3.bf16.msra.mxu0 %v3300_v60  ;;  %3166 = vmatpush3.bf16.msra.mxu1 %v3300_v60  ;;  %v2448_v60 = vcombine.high %v3708_v4, %v3710_v5 }
  0x97   : > { %2612 = vmatprep.subr.bf16.mxu0 %v3301_v61  ;;  %3159 = vmatprep.subr.bf16.mxu1 %v3301_v61  ;;  %v2469_v61 = vcombine.low %v3753_v26, %v3756_v27 }
  0x9a   : > { %2613 = vmatpush3.bf16.msra.mxu0 %v3302_v62  ;;  %3167 = vmatpush3.bf16.msra.mxu1 %v3302_v62  ;;  %v2472_v62 = vcombine.high %v3758_v28, %v3760_v29 }
  0x9b   : > { %2614 = vmatprep.subr.bf16.mxu0 %v3303_v63  ;;  %3160 = vmatprep.subr.bf16.mxu1 %v3303_v63  ;;  %v2494_v63 = vcombine.low %v3785_v38, %v3791_v39 }
  0x9e   : > { %2615 = vmatpush3.bf16.msra.mxu0 %v3304_v49  ;;  %3168 = vmatpush3.bf16.msra.mxu1 %v3304_v49  ;;  %v2447_v49 = vcombine.low %v3708_v4, %v3710_v5 }
  0x9f   : > { %2616 = vmatprep.subr.bf16.mxu0 %v3305_v50  ;;  %3161 = vmatprep.subr.bf16.mxu1 %v3305_v50  ;;  %v2450_v50 = vcombine.high %v3712_v6, %v3714_v7 }
  0xa2   : > { %2617 = vmatpush3.bf16.msra.mxu0 %v3306_v51  ;;  %3169 = vmatpush3.bf16.msra.mxu1 %v3306_v51  ;;  %v2471_v51 = vcombine.low %v3758_v28, %v3760_v29 }
  0xa3   : > { %3010 = vmatprep.subr.bf16.mxu1 %v2491_v52 }
  0xa5   : > { %649 = vmatmul.mubr.bf16.vlgmr.msra.gmra.mrb[0].mxu0 %v2443_v53  ;;  %745 = vmatmul.mubr.bf16.vlgmr.msra.gmra.mrb[0].mxu1 %v2467_v55  ;;  %v2449_v53 = vcombine.low %v3712_v6, %v3714_v7  ;;  %v2473_v55 = vcombine.low %v3762_v30, %v3764_v31 }
  0xa6   : > { %656 = vmatprep.mubr.bf16.mxu0 %v2446_v54  ;;  %752 = vmatprep.mubr.bf16.mxu1 %v2470_v56  ;;  %v2452_v54 = vcombine.high %v3716_v8, %v3718_v9  ;;  %v2451_v56 = vcombine.low %v3716_v8, %v3718_v9 }
  0xa7   : > { %3011 = vmatpush3.bf16.msra.mxu1 %v2491_v52  ;;  %v2474_v52 = vcombine.high %v3762_v30, %v3764_v31 }
  0xa8   : > { %3012 = vmatprep.subr.bf16.mxu1 %v2492_v57 }
  0xab   : > { %3013 = vmatpush3.bf16.msra.mxu1 %v2492_v57  ;;  %v2454_v57 = vcombine.high %v3720_v10, %v3722_v11 }
  0xac   : > { %3014 = vmatprep.subr.bf16.mxu1 %v2493_v58 }
  0xad   : > { %657 = vmatmul.mubr.bf16.gmra.mrb[4].mxu0 %v2445_v59  ;;  %753 = vmatmul.mubr.bf16.gmra.mrb[4].mxu1 %v2469_v61  ;;  %v2456_v59 = vcombine.high %v3724_v12, %v3726_v13  ;;  %v2458_v61 = vcombine.high %v3728_v14, %v3731_v15 }
  0xae   : > { %664 = vmatprep.mubr.bf16.mxu0 %v2448_v60  ;;  %760 = vmatprep.mubr.bf16.mxu1 %v2472_v62  ;;  %v2455_v60 = vcombine.low %v3724_v12, %v3726_v13  ;;  %v2457_v62 = vcombine.low %v3728_v14, %v3731_v15 }
  0xaf   : > { %3015 = vmatpush3.bf16.msra.mxu1 %v2493_v58  ;;  %v2453_v58 = vcombine.low %v3720_v10, %v3722_v11 }
  0xb0   : > { %3016 = vmatprep.subr.bf16.mxu1 %v2494_v63 }
  0xb3   : > { %3017 = vmatpush3.bf16.msra.mxu1 %v2494_v63  ;;  %v2460_v63 = vcombine.high %v3733_v16, %v3735_v17 }
  0xb5   : > { %665 = vmatmul.mubr.bf16.gmra.mrb[8].mxu0 %v2447_v49  ;;  %761 = vmatmul.mubr.bf16.gmra.mrb[8].mxu1 %v2471_v51  ;;  %v2459_v49 = vcombine.low %v3733_v16, %v3735_v17  ;;  %v2461_v51 = vcombine.low %v3737_v18, %v3739_v19 }
  0xb6   : > { %672 = vmatprep.mubr.bf16.mxu0 %v2450_v50  ;;  %768 = vmatprep.mubr.bf16.mxu1 %v2474_v52  ;;  %v2462_v50 = vcombine.high %v3737_v18, %v3739_v19  ;;  %v2464_v52 = vcombine.high %v3741_v20, %v3743_v21 }
  0xbd   : > { %673 = vmatmul.mubr.bf16.gmra.mrb[12].mxu0 %v2449_v53  ;;  %769 = vmatmul.mubr.bf16.gmra.mrb[12].mxu1 %v2473_v55  ;;  %v2463_v53 = vcombine.low %v3741_v20, %v3743_v21  ;;  %v2495_v55 = vcombine.low %v3794_v40, %v3797_v41 }
  0xbe   : > { %680 = vmatprep.mubr.bf16.mxu0 %v2452_v54  ;;  %v2466_v54 = vcombine.high %v3745_v22, %v3747_v23 }
  0xbf   : > { %3018 = vmatprep.subr.bf16.mxu1 %v2495_v55 }
  0xc0   : > { %3019 = vmatpush3.bf16.msra.mxu1 %v2495_v55 }
  0xc5   : > { %681 = vmatmul.mubr.bf16.gmra.mrb[16].mxu0 %v2451_v56  ;;  %v2465_v56 = vcombine.low %v3745_v22, %v3747_v23 }
  0xc6   : > { %688 = vmatprep.mubr.bf16.mxu0 %v2454_v57  ;;  %v2496_v57 = vcombine.low %v3800_v42, %v3803_v43 }
  0xc8   : > { %3020 = vmatprep.subr.bf16.mxu1 %v2496_v57 }
  0xc9   : > { %3021 = vmatpush3.bf16.msra.mxu1 %v2496_v57 }
  0xcd   : > { %689 = vmatmul.mubr.bf16.gmra.mrb[20].mxu0 %v2453_v58  ;;  %v2497_v58 = vcombine.low %v3806_v44, %v3809_v45 }
  0xce   : > { %696 = vmatprep.mubr.bf16.mxu0 %v2456_v59  ;;  %v2498_v59 = vcombine.low %v3812_v46, %v3815_v47 }
  0xcf   : > { %3022 = vmatprep.subr.bf16.mxu1 %v2497_v58 }
  0xd0   : > { %3023 = vmatpush3.bf16.msra.mxu1 %v2497_v58 }
  0xd1   : > { %3024 = vmatprep.subr.bf16.mxu1 %v2498_v59 }
  0xd4   : > { %3025 = vmatpush3.bf16.msra.mxu1 %v2498_v59 }
  0xd5   : > { %697 = vmatmul.mubr.bf16.gmra.mrb[24].mxu0 %v2455_v60 }
  0xd6   : > { %704 = vmatprep.mubr.bf16.mxu0 %v2458_v61 }
  0xdd   : > { %705 = vmatmul.mubr.bf16.gmra.mrb[28].mxu0 %v2457_v62 }
  0xde   : > { %712 = vmatprep.mubr.bf16.mxu0 %v2460_v63 }
  0xe5   : > { %713 = vmatmul.mubr.bf16.gmra.mrb[32].mxu0 %v2459_v49 }
  0xe6   : > { %720 = vmatprep.mubr.bf16.mxu0 %v2462_v50 }
  0xed   : > { %721 = vmatmul.mubr.bf16.gmra.mrb[36].mxu0 %v2461_v51 }
  0xee   : > { %728 = vmatprep.mubr.bf16.mxu0 %v2464_v52 }
  0xf5   : > { %729 = vmatmul.mubr.bf16.gmra.mrb[40].mxu0 %v2463_v53 }
  0xf6   : > { %736 = vmatprep.mubr.bf16.mxu0 %v2466_v54 }
  0xfd   : > { %737 = vmatmul.mubr.bf16.gmra.mrb[44].mxu0 %v2465_v56 }
 0x178   : > { %v2618_v60 = vpop.f32.mrb[0].mxu0  ;;  %v2690_v62 = vpop.f32.mrb[0].mxu1 }
 0x179   : > { %v2619_v61 = vpop.f32.mrb[1].mxu0  ;;  %v2691_v50 = vpop.f32.mrb[1].mxu1 }
 0x17a   : > { %v2620_v63 = vadd.f32 %v2619_v61, %v2618_v60  ;;  %v2621_v49 = vpop.f32.mrb[2].mxu0  ;;  %v3900_v52 = vadd.f32 %v2691_v50, %v2690_v62  ;;  %v2693_v53 = vpop.f32.mrb[2].mxu1 }
 0x17b   : > { %v2622_v51 = vpop.f32.mrb[3].mxu0  ;;  %v2694_v55 = vpop.f32.mrb[3].mxu1 }
 0x17c   : > { %v2623_v54 = vadd.f32 %v2622_v51, %v2621_v49  ;;  %v3902_v56 = vadd.f32 %v2694_v55, %v2693_v53 }
 0x17e   : > { %v777_v57 = vpack.c.bf16 %v2623_v54, %v2620_v63 }
 0x180   : > { %v2624_v46 = vpop.f32.mrb[4].mxu0  ;;  %3026 = vmatprep.mubr.bf16.mxu1 %v777_v57  ;;  %v2696_v47 = vpop.f32.mrb[4].mxu1 }
 0x181   : > { %v2625_v59 = vpop.f32.mrb[5].mxu0  ;;  %v2697_v61 = vpop.f32.mrb[5].mxu1 }
 0x182   : > { %v2626_v44 = vadd.f32 %v2625_v59, %v2624_v46  ;;  %v2627_v60 = vpop.f32.mrb[6].mxu0  ;;  %v3906_v42 = vadd.f32 %v2697_v61, %v2696_v47  ;;  %v2699_v62 = vpop.f32.mrb[6].mxu1 }
 0x183   : > { %v2628_v45 = vpop.f32.mrb[7].mxu0  ;;  %v2700_v49 = vpop.f32.mrb[7].mxu1 }
 0x184   : > { %v2629_v50 = vadd.f32 %v2628_v45, %v2627_v60  ;;  %v3908_v51 = vadd.f32 %v2700_v49, %v2699_v62 }
 0x186   : > { %v778_v53 = vpack.c.bf16 %v2629_v50, %v2626_v44 }
 0x188   : > { %v2630_v54 = vpop.f32.mrb[8].mxu0  ;;  %3027 = vmatmul.mubr.bf16.vlgmr.msra.gmra.mrb[16].mxu1 %v778_v53  ;;  %v2702_v57 = vpop.f32.mrb[8].mxu1 }
 0x189   : > { %v2631_v55 = vpop.f32.mrb[9].mxu0  ;;  %v2703_v59 = vpop.f32.mrb[9].mxu1 }
 0x18a   : > { %v2632_v58 = vadd.f32 %v2631_v55, %v2630_v54  ;;  %v2633_v46 = vpop.f32.mrb[10].mxu0  ;;  %v3912_v40 = vadd.f32 %v2703_v59, %v2702_v57  ;;  %v2705_v47 = vpop.f32.mrb[10].mxu1 }
 0x18b   : > { %v2634_v43 = vpop.f32.mrb[11].mxu0  ;;  %v2706_v45 = vpop.f32.mrb[11].mxu1 }
 0x18c   : > { %v2635_v61 = vadd.f32 %v2634_v43, %v2633_v46  ;;  %v3914_v60 = vadd.f32 %v2706_v45, %v2705_v47 }
 0x18e   : > { %v779_v62 = vpack.c.bf16 %v2635_v61, %v2632_v58 }
 0x190   : > { %v2636_v50 = vpop.f32.mrb[12].mxu0  ;;  %3030 = vmatprep.mubr.bf16.mxu1 %v779_v62  ;;  %v2708_v53 = vpop.f32.mrb[12].mxu1 }
 0x191   : > { %v2637_v49 = vpop.f32.mrb[13].mxu0  ;;  %v2709_v55 = vpop.f32.mrb[13].mxu1 }
 0x192   : > { %v2638_v63 = vadd.f32 %v2637_v49, %v2636_v50  ;;  %v2639_v54 = vpop.f32.mrb[14].mxu0  ;;  %v3918_v22 = vadd.f32 %v2709_v55, %v2708_v53  ;;  %v2711_v57 = vpop.f32.mrb[14].mxu1 }
 0x193   : > { %v2640_v41 = vpop.f32.mrb[15].mxu0  ;;  %v2712_v43 = vpop.f32.mrb[15].mxu1 }
 0x194   : > { %v2641_v59 = vadd.f32 %v2640_v41, %v2639_v54  ;;  %v3920_v46 = vadd.f32 %v2712_v43, %v2711_v57 }
 0x196   : > { %v780_v47 = vpack.c.bf16 %v2641_v59, %v2638_v63 }
 0x198   : > { %v2642_v61 = vpop.f32.mrb[16].mxu0  ;;  %3031 = vmatmul.mubr.bf16.gmra.mrb[20].mxu1 %v780_v47 }
 0x199   : > { %v2643_v45 = vpop.f32.mrb[17].mxu0 }
 0x19a   : > { %v2644_v62 = vadd.f32 %v2643_v45, %v2642_v61  ;;  %v2645_v44 = vpop.f32.mrb[18].mxu0 }
 0x19b   : > { %v2646_v50 = vpop.f32.mrb[19].mxu0 }
 0x19c   : > { %v2647_v49 = vadd.f32 %v2646_v50, %v2645_v44 }
 0x19e   : > { %v781_v23 = vpack.c.bf16 %v2647_v49, %v2644_v62 }
 0x1a0   : > { %v2648_v20 = vpop.f32.mrb[20].mxu0  ;;  %3034 = vmatprep.mubr.bf16.mxu1 %v781_v23 }
 0x1a1   : > { %v2649_v53 = vpop.f32.mrb[21].mxu0 }
 0x1a2   : > { %v2650_v55 = vadd.f32 %v2649_v53, %v2648_v20  ;;  %v2651_v41 = vpop.f32.mrb[22].mxu0 }
 0x1a3   : > { %v2652_v54 = vpop.f32.mrb[23].mxu0 }
 0x1a4   : > { %v2653_v57 = vadd.f32 %v2652_v54, %v2651_v41 }
 0x1a6   : > { %v782_v43 = vpack.c.bf16 %v2653_v57, %v2650_v55 }
 0x1a8   : > { %v2654_v63 = vpop.f32.mrb[24].mxu0  ;;  %3035 = vmatmul.mubr.bf16.gmra.mrb[24].mxu1 %v782_v43 }
 0x1a9   : > { %v2655_v59 = vpop.f32.mrb[25].mxu0 }
 0x1aa   : > { %v2656_v58 = vadd.f32 %v2655_v59, %v2654_v63  ;;  %v2657_v21 = vpop.f32.mrb[26].mxu0 }
 0x1ab   : > { %v2658_v47 = vpop.f32.mrb[27].mxu0 }
 0x1ac   : > { %v2659_v18 = vadd.f32 %v2658_v47, %v2657_v21 }
 0x1ae   : > { %v783_v61 = vpack.c.bf16 %v2659_v18, %v2656_v58 }
 0x1b0   : > { %v2660_v45 = vpop.f32.mrb[28].mxu0  ;;  %3038 = vmatprep.mubr.bf16.mxu1 %v783_v61 }
 0x1b1   : > { %v2661_v44 = vpop.f32.mrb[29].mxu0 }
 0x1b2   : > { %v2662_v62 = vadd.f32 %v2661_v44, %v2660_v45  ;;  %v2663_v50 = vpop.f32.mrb[30].mxu0 }
 0x1b3   : > { %v2664_v23 = vpop.f32.mrb[31].mxu0 }
 0x1b4   : > { %v2665_v49 = vadd.f32 %v2664_v23, %v2663_v50 }
 0x1b6   : > { %v784_v20 = vpack.c.bf16 %v2665_v49, %v2662_v62 }
 0x1b8   : > { %v2666_v53 = vpop.f32.mrb[32].mxu0  ;;  %3039 = vmatmul.mubr.bf16.gmra.mrb[28].mxu1 %v784_v20 }
 0x1b9   : > { %v2667_v41 = vpop.f32.mrb[33].mxu0 }
 0x1ba   : > { %v2668_v55 = vadd.f32 %v2667_v41, %v2666_v53  ;;  %v2669_v54 = vpop.f32.mrb[34].mxu0 }
 0x1bb   : > { %v2670_v57 = vpop.f32.mrb[35].mxu0 }
 0x1bc   : > { %v2671_v43 = vadd.f32 %v2670_v57, %v2669_v54 }
 0x1be   : > { %v785_v63 = vpack.c.bf16 %v2671_v43, %v2668_v55 }
 0x1c0   : > { %v2672_v59 = vpop.f32.mrb[36].mxu0  ;;  %3042 = vmatprep.mubr.bf16.mxu1 %v785_v63 }
 0x1c1   : > { %v2673_v21 = vpop.f32.mrb[37].mxu0 }
 0x1c2   : > { %v2674_v18 = vadd.f32 %v2673_v21, %v2672_v59  ;;  %v2675_v58 = vpop.f32.mrb[38].mxu0  ;;  %v4373_v21 = vpack.c.bf16 %v3902_v56, %v3900_v52 }
 0x1c3   : > { %v2676_v47 = vpop.f32.mrb[39].mxu0 }
 0x1c4   : > { %v2677_v61 = vadd.f32 %v2676_v47, %v2675_v58  ;;  %v4375_v58 = vpack.c.bf16 %v3914_v60, %v3912_v40  ;;  %v4376_v47 = vpack.c.bf16 %v3920_v46, %v3918_v22 }
 0x1c6   : > { %v786_v45 = vpack.c.bf16 %v2677_v61, %v2674_v18  ;;  %v4374_v18 = vpack.c.bf16 %v3908_v51, %v3906_v42  ;;  %v794_v61 = vlaneseq }
 0x1c8   : > { %v2678_v44 = vpop.f32.mrb[40].mxu0  ;;  %3043 = vmatmul.mubr.bf16.gmra.mrb[32].mxu1 %v786_v45  ;;  %v795_v45 = vshrl.u32 %v794_v61, 7 }
 0x1c9   : > { %v2679_v50 = vpop.f32.mrb[41].mxu0 }
 0x1ca   : > { %v2680_v62 = vadd.f32 %v2679_v50, %v2678_v44  ;;  %v2681_v23 = vpop.f32.mrb[42].mxu0  ;;  %v796_v44 = vsub.s32 0, %v795_v45 }
 0x1cb   : > { %v2682_v49 = vpop.f32.mrb[43].mxu0 }
 0x1cc   : > { %v2683_v20 = vadd.f32 %v2682_v49, %v2681_v23  ;;  %v3937_v50 = vrot.slane %v3817_v48, %v796_v44 }
 0x1ce   : > { %v787_v53 = vpack.c.bf16 %v2683_v20, %v2680_v62 }
 0x1d0   : > { %v2684_v41 = vpop.f32.mrb[44].mxu0  ;;  %3046 = vmatprep.mubr.bf16.mxu1 %v787_v53 }
 0x1d1   : > { %v2685_v54 = vpop.f32.mrb[45].mxu0 }
 0x1d2   : > { %v2686_v55 = vadd.f32 %v2685_v54, %v2684_v41  ;;  %v2687_v57 = vpop.f32.mrb[46].mxu0 }
 0x1d3   : > { %v2688_v43 = vpop.f32.mrb[47].mxu0 }
 0x1d4   : > { %v2689_v63 = vadd.f32 %v2688_v43, %v2687_v57 }
 0x1d6   : > { %v788_v59 = vpack.c.bf16 %v2689_v63, %v2686_v55 }
 0x1d8   : > { %3047 = vmatmul.mubr.bf16.gmra.mrb[36].mxu1 %v788_v59 }
 0x1d9   : > { %3050 = vmatprep.mubr.bf16.mxu1 %v4373_v21 }
 0x1e0   : > { %3051 = vmatmul.mubr.bf16.gmra.mrb[40].mxu1 %v4374_v18 }
 0x1e1   : > { %3054 = vmatprep.mubr.bf16.mxu1 %v4375_v58 }
 0x1e8   : > { %3055 = vmatmul.mubr.bf16.gmra.mrb[44].mxu1 %v4376_v47 }
 0x25b   : > { %v3028_v52 = vpop.f32.mrb[16].mxu1 }
 0x25c   : > { %v890_v56 = vadd.f32 %v3028_v52, %v3937_v50  ;;  %v881_v62 = vpop.f32.mrb[17].mxu1 }
 0x25d   : > { %v882_v42 = vadd.f32 %v881_v62, %v3937_v50  ;;  %v3029_v51 = vpop.f32.mrb[18].mxu1 }
 0x25e   : > { %v893_v40 = vadd.f32 %v3029_v51, %v3937_v50  ;;  %v884_v60 = vpop.f32.mrb[19].mxu1  ;;  %v1010_v22 = vmax.f32 %v890_v56, 0.0 }
 0x25f   : > { %v885_v23 = vadd.f32 %v884_v60, %v3937_v50  ;;  %v1008_v49 = vmax.f32 %v882_v42, 0.0 }
 0x260   : > { %v1011_v46 = vmax.f32 %v893_v40, 0.0 }
 0x261   : > { %v1009_v20 = vmax.f32 %v885_v23, 0.0 }
 0x262   : > { %v1041_v53 = vpack.c.bf16 %v1011_v46, %v1010_v22 }
 0x263   : > { %v1040_v41 = vpack.c.bf16 %v1009_v20, %v1008_v49 }
 0x264   : > { %1061 = vst [vmem:[#allocation2 + $0x8] sm:$0xff] %v1041_v53 }
 0x265   : > { %1060 = vst [vmem:[#allocation2] sm:$0xff] %v1040_v41 }
 0x26b   : > { %v3032_v54 = vpop.f32.mrb[20].mxu1 }
 0x26c   : > { %v906_v55 = vadd.f32 %v3032_v54, %v3937_v50  ;;  %v897_v57 = vpop.f32.mrb[21].mxu1 }
 0x26d   : > { %v898_v43 = vadd.f32 %v897_v57, %v3937_v50  ;;  %v3033_v63 = vpop.f32.mrb[22].mxu1 }
 0x26e   : > { %v909_v59 = vadd.f32 %v3033_v63, %v3937_v50  ;;  %v900_v21 = vpop.f32.mrb[23].mxu1  ;;  %v1014_v58 = vmax.f32 %v906_v55, 0.0 }
 0x26f   : > { %v901_v18 = vadd.f32 %v900_v21, %v3937_v50  ;;  %v1012_v61 = vmax.f32 %v898_v43, 0.0 }
 0x270   : > { %v1015_v47 = vmax.f32 %v909_v59, 0.0 }
 0x271   : > { %v1013_v45 = vmax.f32 %v901_v18, 0.0 }
 0x272   : > { %v1043_v44 = vpack.c.bf16 %v1015_v47, %v1014_v58 }
 0x273   : > { %v1042_v52 = vpack.c.bf16 %v1013_v45, %v1012_v61 }
 0x274   : > { %1063 = vst [vmem:[#allocation2 + $0x18] sm:$0xff] %v1043_v44 }
 0x275   : > { %1062 = vst [vmem:[#allocation2 + $0x10] sm:$0xff] %v1042_v52 }
 0x27b   : > { %v3036_v56 = vpop.f32.mrb[24].mxu1 }
 0x27c   : > { %v922_v62 = vadd.f32 %v3036_v56, %v3937_v50  ;;  %v913_v42 = vpop.f32.mrb[25].mxu1 }
 0x27d   : > { %v914_v51 = vadd.f32 %v913_v42, %v3937_v50  ;;  %v3037_v40 = vpop.f32.mrb[26].mxu1 }
 0x27e   : > { %v925_v60 = vadd.f32 %v3037_v40, %v3937_v50  ;;  %v916_v23 = vpop.f32.mrb[27].mxu1  ;;  %v1018_v46 = vmax.f32 %v922_v62, 0.0 }
 0x27f   : > { %v917_v22 = vadd.f32 %v916_v23, %v3937_v50  ;;  %v1016_v20 = vmax.f32 %v914_v51, 0.0 }
 0x280   : > { %v1019_v49 = vmax.f32 %v925_v60, 0.0 }
 0x281   : > { %v1017_v53 = vmax.f32 %v917_v22, 0.0 }
 0x282   : > { %v1045_v41 = vpack.c.bf16 %v1019_v49, %v1018_v46 }
 0x283   : > { %v1044_v54 = vpack.c.bf16 %v1017_v53, %v1016_v20 }
 0x284   : > { %1065 = vst [vmem:[#allocation2 + $0x28] sm:$0xff] %v1045_v41 }
 0x285   : > { %1064 = vst [vmem:[#allocation2 + $0x20] sm:$0xff] %v1044_v54 }
 0x28b   : > { %v3040_v55 = vpop.f32.mrb[28].mxu1 }
 0x28c   : > { %v938_v57 = vadd.f32 %v3040_v55, %v3937_v50  ;;  %v929_v43 = vpop.f32.mrb[29].mxu1 }
 0x28d   : > { %v930_v63 = vadd.f32 %v929_v43, %v3937_v50  ;;  %v3041_v59 = vpop.f32.mrb[30].mxu1 }
 0x28e   : > { %v941_v21 = vadd.f32 %v3041_v59, %v3937_v50  ;;  %v932_v18 = vpop.f32.mrb[31].mxu1  ;;  %v1022_v47 = vmax.f32 %v938_v57, 0.0 }
 0x28f   : > { %v933_v58 = vadd.f32 %v932_v18, %v3937_v50  ;;  %v1020_v45 = vmax.f32 %v930_v63, 0.0 }
 0x290   : > { %v1023_v61 = vmax.f32 %v941_v21, 0.0 }
 0x291   : > { %v1021_v44 = vmax.f32 %v933_v58, 0.0 }
 0x292   : > { %v1047_v52 = vpack.c.bf16 %v1023_v61, %v1022_v47 }
 0x293   : > { %v1046_v56 = vpack.c.bf16 %v1021_v44, %v1020_v45 }
 0x294   : > { %1067 = vst [vmem:[#allocation2 + $0x38] sm:$0xff] %v1047_v52 }
 0x295   : > { %1066 = vst [vmem:[#allocation2 + $0x30] sm:$0xff] %v1046_v56 }
 0x29b   : > { %v3044_v62 = vpop.f32.mrb[32].mxu1 }
 0x29c   : > { %v954_v42 = vadd.f32 %v3044_v62, %v3937_v50  ;;  %v945_v51 = vpop.f32.mrb[33].mxu1 }
 0x29d   : > { %v946_v40 = vadd.f32 %v945_v51, %v3937_v50  ;;  %v3045_v60 = vpop.f32.mrb[34].mxu1 }
 0x29e   : > { %v957_v23 = vadd.f32 %v3045_v60, %v3937_v50  ;;  %v948_v22 = vpop.f32.mrb[35].mxu1  ;;  %v1026_v49 = vmax.f32 %v954_v42, 0.0 }
 0x29f   : > { %v949_v46 = vadd.f32 %v948_v22, %v3937_v50  ;;  %v1024_v53 = vmax.f32 %v946_v40, 0.0 }
 0x2a0   : > { %v1027_v20 = vmax.f32 %v957_v23, 0.0 }
 0x2a1   : > { %v1025_v41 = vmax.f32 %v949_v46, 0.0 }
 0x2a2   : > { %v1049_v54 = vpack.c.bf16 %v1027_v20, %v1026_v49 }
 0x2a3   : > { %v1048_v55 = vpack.c.bf16 %v1025_v41, %v1024_v53 }
 0x2a4   : > { %1069 = vst [vmem:[#allocation2 + $0x48] sm:$0xff] %v1049_v54 }
 0x2a5   : > { %1068 = vst [vmem:[#allocation2 + $0x40] sm:$0xff] %v1048_v55 }
 0x2ab   : > { %v3048_v57 = vpop.f32.mrb[36].mxu1 }
 0x2ac   : > { %v970_v43 = vadd.f32 %v3048_v57, %v3937_v50  ;;  %v961_v63 = vpop.f32.mrb[37].mxu1 }
 0x2ad   : > { %v962_v59 = vadd.f32 %v961_v63, %v3937_v50  ;;  %v3049_v21 = vpop.f32.mrb[38].mxu1 }
 0x2ae   : > { %v973_v18 = vadd.f32 %v3049_v21, %v3937_v50  ;;  %v964_v58 = vpop.f32.mrb[39].mxu1  ;;  %v1030_v61 = vmax.f32 %v970_v43, 0.0 }
 0x2af   : > { %v965_v47 = vadd.f32 %v964_v58, %v3937_v50  ;;  %v1028_v44 = vmax.f32 %v962_v59, 0.0 }
 0x2b0   : > { %v1031_v45 = vmax.f32 %v973_v18, 0.0 }
 0x2b1   : > { %v1029_v52 = vmax.f32 %v965_v47, 0.0 }
 0x2b2   : > { %v1051_v56 = vpack.c.bf16 %v1031_v45, %v1030_v61 }
 0x2b3   : > { %v1050_v62 = vpack.c.bf16 %v1029_v52, %v1028_v44  ;;  %v3052_v42 = vpop.f32.mrb[40].mxu1 }
 0x2b4   : > { %1071 = vst [vmem:[#allocation2 + $0x58] sm:$0xff] %v1051_v56  ;;  %v986_v51 = vadd.f32 %v3052_v42, %v3937_v50  ;;  %v977_v40 = vpop.f32.mrb[41].mxu1 }
 0x2b5   : > { %1070 = vst [vmem:[#allocation2 + $0x50] sm:$0xff] %v1050_v62  ;;  %v978_v60 = vadd.f32 %v977_v40, %v3937_v50  ;;  %v3053_v23 = vpop.f32.mrb[42].mxu1 }
 0x2b6   : > { %v989_v22 = vadd.f32 %v3053_v23, %v3937_v50  ;;  %v980_v46 = vpop.f32.mrb[43].mxu1  ;;  %v1034_v20 = vmax.f32 %v986_v51, 0.0 }
 0x2b7   : > { %v981_v49 = vadd.f32 %v980_v46, %v3937_v50  ;;  %v1032_v41 = vmax.f32 %v978_v60, 0.0 }
 0x2b8   : > { %v1035_v53 = vmax.f32 %v989_v22, 0.0 }
 0x2b9   : > { %v1033_v54 = vmax.f32 %v981_v49, 0.0 }
 0x2ba   : > { %v1053_v55 = vpack.c.bf16 %v1035_v53, %v1034_v20 }
 0x2bb   : > { %v1052_v57 = vpack.c.bf16 %v1033_v54, %v1032_v41  ;;  %v3056_v43 = vpop.f32.mrb[44].mxu1 }
 0x2bc   : > { %1073 = vst [vmem:[#allocation2 + $0x68] sm:$0xff] %v1053_v55  ;;  %v1002_v63 = vadd.f32 %v3056_v43, %v3937_v50  ;;  %v993_v59 = vpop.f32.mrb[45].mxu1 }
 0x2bd   : > { %1072 = vst [vmem:[#allocation2 + $0x60] sm:$0xff] %v1052_v57  ;;  %v994_v21 = vadd.f32 %v993_v59, %v3937_v50  ;;  %v3057_v18 = vpop.f32.mrb[46].mxu1 }
 0x2be   : > { %v1005_v58 = vadd.f32 %v3057_v18, %v3937_v50  ;;  %v996_v47 = vpop.f32.mrb[47].mxu1  ;;  %v1038_v45 = vmax.f32 %v1002_v63, 0.0 }
 0x2bf   : > { %v997_v61 = vadd.f32 %v996_v47, %v3937_v50  ;;  %v1036_v52 = vmax.f32 %v994_v21, 0.0 }
 0x2c0   : > { %v1039_v44 = vmax.f32 %v1005_v58, 0.0 }
 0x2c1   : > { %v1037_v56 = vmax.f32 %v997_v61, 0.0 }
 0x2c2   : > { %v1055_v62 = vpack.c.bf16 %v1039_v44, %v1038_v45 }
 0x2c3   : > { %v1054_v42 = vpack.c.bf16 %v1037_v56, %v1036_v52 }
 0x2c4   : > { %1075 = vst [vmem:[#allocation2 + $0x78] sm:$0xff] %v1055_v62 }
 0x2c5   : > { %1074 = vst [vmem:[#allocation2 + $0x70] sm:$0xff] %v1054_v42 }
 0x2c6 PF: > { %p2499_p0 = scmp.ne.s32.totalorder %s3473_s18, 1 }
 0x2c7   : > { %v1088_v51 = vld [vmem:[#allocation2 + $0x40] sm:$0xff] (!%p2499_p0)  ;;  %v1089_v60 = vld [vmem:[#allocation2 + $0x48] sm:$0xff] (!%p2499_p0)  ;;  %v2501_v23 = vcombine.high (!%p2499_p0), %v3700_v0, %v3702_v1  ;;  %v1090_v22 = vld [vmem:[#allocation2 + $0x50] sm:$0xff] (!%p2499_p0)  ;;  %v2525_v46 = vcombine.high (!%p2499_p0), %v3749_v24, %v3751_v25  ;;  %v2500_v18 = vcombine.low (!%p2499_p0), %v3700_v0, %v3702_v1  ;;  %v2532_v58 = vcombine.low (!%p2499_p0), %v3767_v32, %v3770_v33 }
 0x2c8   : > { %1079 = sbr.rel (%p2499_p0) target bundleno = 1289 (0x509), region = 56  ;;  %v1080_v40 = vld [vmem:[#allocation2] sm:$0xff] (!%p2499_p0)  ;;  %2738 = vmatprep.subr.bf16.mxu0 (!%p2499_p0), %v1088_v51  ;;  %v1081_v50 = vld [vmem:[#allocation2 + $0x8] sm:$0xff] (!%p2499_p0)  ;;  %3170 = vmatprep.subr.bf16.mxu1 (!%p2499_p0), %v1088_v51  ;;  %v1082_v49 = vld [vmem:[#allocation2 + $0x10] sm:$0xff] (!%p2499_p0)  ;;  %v2503_v47 = vcombine.high (!%p2499_p0), %v3704_v2, %v3706_v3  ;;  %v2524_v61 = vcombine.low (!%p2499_p0), %v3749_v24, %v3751_v25  ;;  %v2527_v45 = vcombine.high (!%p2499_p0), %v3753_v26, %v3756_v27 }
 0x2c9   : > { %2739 = vmatpush3.bf16.msra.mxu0 (!%p2499_p0), %v1080_v40  ;;  %1288 = vmatprep.mubr.bf16.mxu0 (!%p2499_p0), %v2501_v23  ;;  %v1091_v20 = vld [vmem:[#allocation2 + $0x58] sm:$0xff] (!%p2499_p0)  ;;  %v1092_v41 = vld [vmem:[#allocation2 + $0x60] sm:$0xff] (!%p2499_p0)  ;;  %v1093_v55 = vld [vmem:[#allocation2 + $0x68] sm:$0xff] (!%p2499_p0)  ;;  %v2533_v44 = vcombine.low (!%p2499_p0), %v3773_v34, %v3776_v35  ;;  %v2502_v52 = vcombine.low (!%p2499_p0), %v3704_v2, %v3706_v3  ;;  %v2534_v56 = vcombine.low (!%p2499_p0), %v3779_v36, %v3782_v37 }
 0x2ca   : > { %2740 = vmatprep.subr.bf16.mxu0 (!%p2499_p0), %v1089_v60  ;;  %3178 = vmatpush3.bf16.msra.mxu1 (!%p2499_p0), %v1080_v40  ;;  %v1083_v53 = vld [vmem:[#allocation2 + $0x18] sm:$0xff] (!%p2499_p0)  ;;  %v1084_v54 = vld [vmem:[#allocation2 + $0x20] sm:$0xff] (!%p2499_p0)  ;;  %v1085_v57 = vld [vmem:[#allocation2 + $0x28] sm:$0xff] (!%p2499_p0)  ;;  %v2505_v62 = vcombine.high (!%p2499_p0), %v3708_v4, %v3710_v5  ;;  %v2526_v42 = vcombine.low (!%p2499_p0), %v3753_v26, %v3756_v27  ;;  %v2529_v51 = vcombine.high (!%p2499_p0), %v3758_v28, %v3760_v29 }
 0x2cb   : > { %3171 = vmatprep.subr.bf16.mxu1 (!%p2499_p0), %v1089_v60  ;;  %1384 = vmatprep.mubr.bf16.mxu1 (!%p2499_p0), %v2525_v46  ;;  %v1086_v63 = vld [vmem:[#allocation2 + $0x30] sm:$0xff] (!%p2499_p0)  ;;  %v1095_v59 = vld [vmem:[#allocation2 + $0x78] sm:$0xff] (!%p2499_p0)  ;;  %v2535_v40 = vcombine.low (!%p2499_p0), %v3785_v38, %v3791_v39  ;;  %v2504_v60 = vcombine.low (!%p2499_p0), %v3708_v4, %v3710_v5  ;;  %v2507_v23 = vcombine.high (!%p2499_p0), %v3712_v6, %v3714_v7 }
 0x2cc   : > { %v1094_v43 = vld [vmem:[#allocation2 + $0x70] sm:$0xff] (!%p2499_p0)  ;;  %v1087_v21 = vld [vmem:[#allocation2 + $0x38] sm:$0xff] (!%p2499_p0)  ;;  %v2506_v46 = vcombine.low (!%p2499_p0), %v3712_v6, %v3714_v7 }
 0x2cd   : > { %2741 = vmatpush3.bf16.msra.mxu0 (!%p2499_p0), %v1081_v50 }
 0x2ce   : > { %2742 = vmatprep.subr.bf16.mxu0 (!%p2499_p0), %v1090_v22  ;;  %3179 = vmatpush3.bf16.msra.mxu1 (!%p2499_p0), %v1081_v50  ;;  %v2528_v50 = vcombine.low (!%p2499_p0), %v3758_v28, %v3760_v29 }
 0x2cf   : > { %3172 = vmatprep.subr.bf16.mxu1 %v1090_v22  ;;  %v2531_v22 = vcombine.high %v3762_v30, %v3764_v31 }
 0x2d1   : > { %2743 = vmatpush3.bf16.msra.mxu0 %v1082_v49 }
 0x2d2   : > { %2744 = vmatprep.subr.bf16.mxu0 %v1091_v20  ;;  %3180 = vmatpush3.bf16.msra.mxu1 %v1082_v49  ;;  %v2509_v49 = vcombine.high %v3716_v8, %v3718_v9 }
 0x2d3   : > { %3173 = vmatprep.subr.bf16.mxu1 %v1091_v20  ;;  %v2530_v20 = vcombine.low %v3762_v30, %v3764_v31 }
 0x2d5   : > { %2745 = vmatpush3.bf16.msra.mxu0 %v1083_v53 }
 0x2d6   : > { %2746 = vmatprep.subr.bf16.mxu0 %v1092_v41  ;;  %3181 = vmatpush3.bf16.msra.mxu1 %v1083_v53  ;;  %v2508_v53 = vcombine.low %v3716_v8, %v3718_v9 }
 0x2d7   : > { %3174 = vmatprep.subr.bf16.mxu1 %v1092_v41  ;;  %v2511_v41 = vcombine.high %v3720_v10, %v3722_v11 }
 0x2d9   : > { %2747 = vmatpush3.bf16.msra.mxu0 %v1084_v54 }
 0x2da   : > { %2748 = vmatprep.subr.bf16.mxu0 %v1093_v55  ;;  %3182 = vmatpush3.bf16.msra.mxu1 %v1084_v54  ;;  %v2510_v54 = vcombine.low %v3720_v10, %v3722_v11 }
 0x2db   : > { %3175 = vmatprep.subr.bf16.mxu1 %v1093_v55  ;;  %v2513_v55 = vcombine.high %v3724_v12, %v3726_v13 }
 0x2dd   : > { %2749 = vmatpush3.bf16.msra.mxu0 %v1085_v57 }
 0x2de   : > { %2750 = vmatprep.subr.bf16.mxu0 %v1094_v43  ;;  %3183 = vmatpush3.bf16.msra.mxu1 %v1085_v57  ;;  %v2512_v57 = vcombine.low %v3724_v12, %v3726_v13 }
 0x2df   : > { %3176 = vmatprep.subr.bf16.mxu1 %v1094_v43  ;;  %v2515_v43 = vcombine.high %v3728_v14, %v3731_v15 }
 0x2e1   : > { %2751 = vmatpush3.bf16.msra.mxu0 %v1086_v63 }
 0x2e2   : > { %2752 = vmatprep.subr.bf16.mxu0 %v1095_v59  ;;  %3184 = vmatpush3.bf16.msra.mxu1 %v1086_v63  ;;  %v2514_v63 = vcombine.low %v3728_v14, %v3731_v15 }
 0x2e3   : > { %3177 = vmatprep.subr.bf16.mxu1 %v1095_v59  ;;  %v2517_v59 = vcombine.high %v3733_v16, %v3735_v17 }
 0x2e5   : > { %2753 = vmatpush3.bf16.msra.mxu0 %v1087_v21 }
 0x2e6   : > { %3185 = vmatpush3.bf16.msra.mxu1 %v1087_v21  ;;  %v2516_v21 = vcombine.low %v3733_v16, %v3735_v17 }
 0x2e7   : > { %3058 = vmatprep.subr.bf16.mxu1 %v2532_v58 }
 0x2e8   : > { %1289 = vmatmul.mubr.bf16.vlgmr.msra.gmra.mrb[0].mxu0 %v2500_v18  ;;  %v4377_v18 = vld [vmem:[#allocation14_spill] sm:$0xff] }
 0x2e9   : > { %1296 = vmatprep.mubr.bf16.mxu0 %v2503_v47  ;;  %1385 = vmatmul.mubr.bf16.vlgmr.msra.gmra.mrb[0].mxu1 %v2524_v61  ;;  %v2518_v47 = vcombine.low %v4377_v18, %v3739_v19  ;;  %v4378_v61 = vld [vmem:[#allocation16_spill] sm:$0xff] }
 0x2ea   : > { %1392 = vmatprep.mubr.bf16.mxu1 %v2527_v45  ;;  %3059 = vmatpush3.bf16.msra.mxu1 %v2532_v58  ;;  %v2519_v58 = vcombine.high %v4377_v18, %v3739_v19  ;;  %v4379_v45 = vld [vmem:[#allocation15_spill] sm:$0xff] }
 0x2eb   : > { %3060 = vmatprep.subr.bf16.mxu1 %v2533_v44 }
 0x2ee   : > { %3061 = vmatpush3.bf16.msra.mxu1 %v2533_v44  ;;  %v2521_v44 = vcombine.high %v4379_v45, %v4378_v61 }
 0x2ef   : > { %3062 = vmatprep.subr.bf16.mxu1 %v2534_v56 }
 0x2f0   : > { %1297 = vmatmul.mubr.bf16.gmra.mrb[4].mxu0 %v2502_v52  ;;  %v2520_v52 = vcombine.low %v4379_v45, %v4378_v61 }
 0x2f1   : > { %1304 = vmatprep.mubr.bf16.mxu0 %v2505_v62  ;;  %1393 = vmatmul.mubr.bf16.gmra.mrb[4].mxu1 %v2526_v42  ;;  %v4381_v62 = vld [vmem:[#allocation17_spill] sm:$0xff] }
 0x2f2   : > { %1400 = vmatprep.mubr.bf16.mxu1 %v2529_v51  ;;  %3063 = vmatpush3.bf16.msra.mxu1 %v2534_v56  ;;  %v4380_v56 = vld [vmem:[#allocation18_spill] sm:$0xff]  ;;  %v4382_v51 = vld [vmem:[#allocation20_spill] sm:$0xff] }
 0x2f3   : > { %3064 = vmatprep.subr.bf16.mxu1 %v2535_v40  ;;  %v2523_v42 = vcombine.high %v4381_v62, %v4380_v56 }
 0x2f6   : > { %3065 = vmatpush3.bf16.msra.mxu1 %v2535_v40  ;;  %v4383_v40 = vld [vmem:[#allocation19_spill] sm:$0xff] }
 0x2f8   : > { %1305 = vmatmul.mubr.bf16.gmra.mrb[8].mxu0 %v2504_v60  ;;  %v2536_v60 = vcombine.low %v4383_v40, %v4382_v51 }
 0x2f9   : > { %1312 = vmatprep.mubr.bf16.mxu0 %v2507_v23  ;;  %1401 = vmatmul.mubr.bf16.gmra.mrb[8].mxu1 %v2528_v50  ;;  %v2522_v23 = vcombine.low %v4381_v62, %v4380_v56  ;;  %v4384_v50 = vld [vmem:[#allocation22_spill] sm:$0xff] }
 0x2fa   : > { %1408 = vmatprep.mubr.bf16.mxu1 %v2531_v22  ;;  %3066 = vmatprep.subr.bf16.mxu1 %v2536_v60  ;;  %v4385_v22 = vld [vmem:[#allocation21_spill] sm:$0xff] }
 0x2fb   : > { %3067 = vmatpush3.bf16.msra.mxu1 %v2536_v60 }
 0x300   : > { %1313 = vmatmul.mubr.bf16.gmra.mrb[12].mxu0 %v2506_v46  ;;  %v2537_v46 = vcombine.low %v4385_v22, %v4384_v50 }
 0x301   : > { %1320 = vmatprep.mubr.bf16.mxu0 %v2509_v49  ;;  %1409 = vmatmul.mubr.bf16.gmra.mrb[12].mxu1 %v2530_v20  ;;  %v4386_v49 = vld [vmem:[#allocation24_spill] sm:$0xff]  ;;  %v4387_v20 = vld [vmem:[#allocation23_spill] sm:$0xff] }
 0x302   : > { %3068 = vmatprep.subr.bf16.mxu1 %v2537_v46 }
 0x303   : > { %3069 = vmatpush3.bf16.msra.mxu1 %v2537_v46 }
 0x308   : > { %1321 = vmatmul.mubr.bf16.gmra.mrb[16].mxu0 %v2508_v53  ;;  %v2538_v53 = vcombine.low %v4387_v20, %v4386_v49 }
 0x309   : > { %1328 = vmatprep.mubr.bf16.mxu0 %v2511_v41  ;;  %v4388_v41 = vld [vmem:[#allocation26_spill] sm:$0xff] }
 0x30a   : > { %3070 = vmatprep.subr.bf16.mxu1 %v2538_v53 }
 0x30b   : > { %3071 = vmatpush3.bf16.msra.mxu1 %v2538_v53 }
 0x310   : > { %1329 = vmatmul.mubr.bf16.gmra.mrb[20].mxu0 %v2510_v54  ;;  %v4389_v54 = vld [vmem:[#allocation25_spill] sm:$0xff] }
 0x311   : > { %1336 = vmatprep.mubr.bf16.mxu0 %v2513_v55  ;;  %v2539_v55 = vcombine.low %v4389_v54, %v4388_v41 }
 0x313   : > { %3072 = vmatprep.subr.bf16.mxu1 %v2539_v55 }
 0x314   : > { %3073 = vmatpush3.bf16.msra.mxu1 %v2539_v55 }
 0x318   : > { %1337 = vmatmul.mubr.bf16.gmra.mrb[24].mxu0 %v2512_v57 }
 0x319   : > { %1344 = vmatprep.mubr.bf16.mxu0 %v2515_v43 }
 0x320   : > { %1345 = vmatmul.mubr.bf16.gmra.mrb[28].mxu0 %v2514_v63 }
 0x321   : > { %1352 = vmatprep.mubr.bf16.mxu0 %v2517_v59 }
 0x328   : > { %1353 = vmatmul.mubr.bf16.gmra.mrb[32].mxu0 %v2516_v21 }
 0x329   : > { %1360 = vmatprep.mubr.bf16.mxu0 %v2519_v58 }
 0x330   : > { %1361 = vmatmul.mubr.bf16.gmra.mrb[36].mxu0 %v2518_v47 }
 0x331   : > { %1368 = vmatprep.mubr.bf16.mxu0 %v2521_v44 }
 0x338   : > { %1369 = vmatmul.mubr.bf16.gmra.mrb[40].mxu0 %v2520_v52 }
 0x339   : > { %1376 = vmatprep.mubr.bf16.mxu0 %v2523_v42 }
 0x340   : > { %1377 = vmatmul.mubr.bf16.gmra.mrb[44].mxu0 %v2522_v23 }
 0x3bb   : > { %v2754_v57 = vpop.f32.mrb[0].mxu0 }
 0x3bc   : > { %v2755_v43 = vpop.f32.mrb[1].mxu0  ;;  %v2826_v21 = vpop.f32.mrb[0].mxu1 }
 0x3bd   : > { %v2756_v63 = vadd.f32 %v2755_v43, %v2754_v57  ;;  %v2757_v59 = vpop.f32.mrb[2].mxu0  ;;  %v2827_v58 = vpop.f32.mrb[1].mxu1 }
 0x3be   : > { %v2758_v18 = vpop.f32.mrb[3].mxu0  ;;  %v4052_v61 = vadd.f32 %v2827_v58, %v2826_v21  ;;  %v2829_v45 = vpop.f32.mrb[2].mxu1 }
 0x3bf   : > { %v2759_v47 = vadd.f32 %v2758_v18, %v2757_v59  ;;  %v2830_v44 = vpop.f32.mrb[3].mxu1 }
 0x3c0   : > { %v4054_v56 = vadd.f32 %v2830_v44, %v2829_v45 }
 0x3c1   : > { %v1417_v52 = vpack.c.bf16 %v2759_v47, %v2756_v63 }
 0x3c3   : > { %v2760_v62 = vpop.f32.mrb[4].mxu0  ;;  %3074 = vmatprep.mubr.bf16.mxu1 %v1417_v52 }
 0x3c4   : > { %v2761_v51 = vpop.f32.mrb[5].mxu0  ;;  %v2832_v23 = vpop.f32.mrb[4].mxu1 }
 0x3c5   : > { %v2762_v40 = vadd.f32 %v2761_v51, %v2760_v62  ;;  %v2763_v60 = vpop.f32.mrb[6].mxu0  ;;  %v2833_v22 = vpop.f32.mrb[5].mxu1 }
 0x3c6   : > { %v2764_v50 = vpop.f32.mrb[7].mxu0  ;;  %v4058_v49 = vadd.f32 %v2833_v22, %v2832_v23  ;;  %v2835_v20 = vpop.f32.mrb[6].mxu1 }
 0x3c7   : > { %v2765_v46 = vadd.f32 %v2764_v50, %v2763_v60  ;;  %v2836_v53 = vpop.f32.mrb[7].mxu1 }
 0x3c8   : > { %v4060_v54 = vadd.f32 %v2836_v53, %v2835_v20 }
 0x3c9   : > { %v1418_v41 = vpack.c.bf16 %v2765_v46, %v2762_v40 }
 0x3cb   : > { %v2766_v55 = vpop.f32.mrb[8].mxu0  ;;  %3075 = vmatmul.mubr.bf16.vlgmr.msra.gmra.mrb[16].mxu1 %v1418_v41 }
 0x3cc   : > { %v2767_v43 = vpop.f32.mrb[9].mxu0  ;;  %v2838_v21 = vpop.f32.mrb[8].mxu1 }
 0x3cd   : > { %v2768_v63 = vadd.f32 %v2767_v43, %v2766_v55  ;;  %v2769_v59 = vpop.f32.mrb[10].mxu0  ;;  %v2839_v58 = vpop.f32.mrb[9].mxu1 }
 0x3ce   : > { %v2770_v18 = vpop.f32.mrb[11].mxu0  ;;  %v4064_v45 = vadd.f32 %v2839_v58, %v2838_v21  ;;  %v2841_v44 = vpop.f32.mrb[10].mxu1 }
 0x3cf   : > { %v2771_v47 = vadd.f32 %v2770_v18, %v2769_v59  ;;  %v2842_v52 = vpop.f32.mrb[11].mxu1 }
 0x3d0   : > { %v4066_v51 = vadd.f32 %v2842_v52, %v2841_v44 }
 0x3d1   : > { %v1419_v62 = vpack.c.bf16 %v2771_v47, %v2768_v63 }
 0x3d3   : > { %v2772_v40 = vpop.f32.mrb[12].mxu0  ;;  %3078 = vmatprep.mubr.bf16.mxu1 %v1419_v62 }
 0x3d4   : > { %v2773_v23 = vpop.f32.mrb[13].mxu0  ;;  %v2844_v46 = vpop.f32.mrb[12].mxu1 }
 0x3d5   : > { %v2774_v50 = vadd.f32 %v2773_v23, %v2772_v40  ;;  %v2775_v22 = vpop.f32.mrb[14].mxu0  ;;  %v2845_v53 = vpop.f32.mrb[13].mxu1 }
 0x3d6   : > { %v2776_v20 = vpop.f32.mrb[15].mxu0  ;;  %v4070_v55 = vadd.f32 %v2845_v53, %v2844_v46  ;;  %v2847_v43 = vpop.f32.mrb[14].mxu1 }
 0x3d7   : > { %v2777_v41 = vadd.f32 %v2776_v20, %v2775_v22  ;;  %v2848_v59 = vpop.f32.mrb[15].mxu1 }
 0x3d8   : > { %v4072_v63 = vadd.f32 %v2848_v59, %v2847_v43 }
 0x3d9   : > { %v1420_v21 = vpack.c.bf16 %v2777_v41, %v2774_v50 }
 0x3db   : > { %v2778_v18 = vpop.f32.mrb[16].mxu0  ;;  %3079 = vmatmul.mubr.bf16.gmra.mrb[20].mxu1 %v1420_v21 }
 0x3dc   : > { %v2779_v47 = vpop.f32.mrb[17].mxu0 }
 0x3dd   : > { %v2780_v44 = vadd.f32 %v2779_v47, %v2778_v18  ;;  %v2781_v52 = vpop.f32.mrb[18].mxu0 }
 0x3de   : > { %v2782_v62 = vpop.f32.mrb[19].mxu0 }
 0x3df   : > { %v2783_v40 = vadd.f32 %v2782_v62, %v2781_v52 }
 0x3e1   : > { %v1421_v23 = vpack.c.bf16 %v2783_v40, %v2780_v44 }
 0x3e3   : > { %v2784_v60 = vpop.f32.mrb[20].mxu0  ;;  %3082 = vmatprep.mubr.bf16.mxu1 %v1421_v23 }
 0x3e4   : > { %v2785_v22 = vpop.f32.mrb[21].mxu0 }
 0x3e5   : > { %v2786_v46 = vadd.f32 %v2785_v22, %v2784_v60  ;;  %v2787_v20 = vpop.f32.mrb[22].mxu0 }
 0x3e6   : > { %v2788_v53 = vpop.f32.mrb[23].mxu0 }
 0x3e7   : > { %v2789_v50 = vadd.f32 %v2788_v53, %v2787_v20 }
 0x3e9   : > { %v1422_v41 = vpack.c.bf16 %v2789_v50, %v2786_v46 }
 0x3eb   : > { %v2790_v43 = vpop.f32.mrb[24].mxu0  ;;  %3083 = vmatmul.mubr.bf16.gmra.mrb[24].mxu1 %v1422_v41 }
 0x3ec   : > { %v2791_v59 = vpop.f32.mrb[25].mxu0 }
 0x3ed   : > { %v2792_v21 = vadd.f32 %v2791_v59, %v2790_v43  ;;  %v2793_v57 = vpop.f32.mrb[26].mxu0 }
 0x3ee   : > { %v2794_v58 = vpop.f32.mrb[27].mxu0 }
 0x3ef   : > { %v2795_v42 = vadd.f32 %v2794_v58, %v2793_v57 }
 0x3f1   : > { %v1423_v18 = vpack.c.bf16 %v2795_v42, %v2792_v21 }
 0x3f3   : > { %v2796_v47 = vpop.f32.mrb[28].mxu0  ;;  %3086 = vmatprep.mubr.bf16.mxu1 %v1423_v18 }
 0x3f4   : > { %v2797_v52 = vpop.f32.mrb[29].mxu0 }
 0x3f5   : > { %v2798_v44 = vadd.f32 %v2797_v52, %v2796_v47  ;;  %v2799_v62 = vpop.f32.mrb[30].mxu0 }
 0x3f6   : > { %v2800_v40 = vpop.f32.mrb[31].mxu0 }
 0x3f7   : > { %v2801_v23 = vadd.f32 %v2800_v40, %v2799_v62 }
 0x3f9   : > { %v1424_v60 = vpack.c.bf16 %v2801_v23, %v2798_v44 }
 0x3fb   : > { %v2802_v22 = vpop.f32.mrb[32].mxu0  ;;  %3087 = vmatmul.mubr.bf16.gmra.mrb[28].mxu1 %v1424_v60 }
 0x3fc   : > { %v2803_v20 = vpop.f32.mrb[33].mxu0 }
 0x3fd   : > { %v2804_v46 = vadd.f32 %v2803_v20, %v2802_v22  ;;  %v2805_v53 = vpop.f32.mrb[34].mxu0 }
 0x3fe   : > { %v2806_v50 = vpop.f32.mrb[35].mxu0 }
 0x3ff   : > { %v2807_v41 = vadd.f32 %v2806_v50, %v2805_v53 }
 0x401   : > { %v1425_v43 = vpack.c.bf16 %v2807_v41, %v2804_v46 }
 0x403   : > { %v2808_v59 = vpop.f32.mrb[36].mxu0  ;;  %3090 = vmatprep.mubr.bf16.mxu1 %v1425_v43 }
 0x404   : > { %v2809_v57 = vpop.f32.mrb[37].mxu0 }
 0x405   : > { %v2810_v42 = vadd.f32 %v2809_v57, %v2808_v59  ;;  %v2811_v58 = vpop.f32.mrb[38].mxu0  ;;  %v4390_v57 = vpack.c.bf16 %v4054_v56, %v4052_v61 }
 0x406   : > { %v2812_v21 = vpop.f32.mrb[39].mxu0 }
 0x407   : > { %v2813_v18 = vadd.f32 %v2812_v21, %v2811_v58  ;;  %v4392_v58 = vpack.c.bf16 %v4066_v51, %v4064_v45  ;;  %v4393_v21 = vpack.c.bf16 %v4072_v63, %v4070_v55 }
 0x409   : > { %v1426_v47 = vpack.c.bf16 %v2813_v18, %v2810_v42  ;;  %v4391_v42 = vpack.c.bf16 %v4060_v54, %v4058_v49  ;;  %v1434_v18 = vlaneseq }
 0x40b   : > { %v2814_v52 = vpop.f32.mrb[40].mxu0  ;;  %3091 = vmatmul.mubr.bf16.gmra.mrb[32].mxu1 %v1426_v47  ;;  %v1435_v47 = vshrl.u32 %v1434_v18, 7 }
 0x40c   : > { %v2815_v62 = vpop.f32.mrb[41].mxu0 }
 0x40d   : > { %v2816_v44 = vadd.f32 %v2815_v62, %v2814_v52  ;;  %v2817_v40 = vpop.f32.mrb[42].mxu0  ;;  %v1436_v52 = vsub.s32 0, %v1435_v47 }
 0x40e   : > { %v2818_v23 = vpop.f32.mrb[43].mxu0 }
 0x40f   : > { %v2819_v60 = vadd.f32 %v2818_v23, %v2817_v40  ;;  %v4089_v62 = vrot.slane %v3817_v48, %v1436_v52 }
 0x411   : > { %v1427_v22 = vpack.c.bf16 %v2819_v60, %v2816_v44 }
 0x413   : > { %v2820_v20 = vpop.f32.mrb[44].mxu0  ;;  %3094 = vmatprep.mubr.bf16.mxu1 %v1427_v22 }
 0x414   : > { %v2821_v53 = vpop.f32.mrb[45].mxu0 }
 0x415   : > { %v2822_v46 = vadd.f32 %v2821_v53, %v2820_v20  ;;  %v2823_v50 = vpop.f32.mrb[46].mxu0 }
 0x416   : > { %v2824_v41 = vpop.f32.mrb[47].mxu0 }
 0x417   : > { %v2825_v43 = vadd.f32 %v2824_v41, %v2823_v50 }
 0x419   : > { %v1428_v59 = vpack.c.bf16 %v2825_v43, %v2822_v46 }
 0x41b   : > { %3095 = vmatmul.mubr.bf16.gmra.mrb[36].mxu1 %v1428_v59 }
 0x41c   : > { %3098 = vmatprep.mubr.bf16.mxu1 %v4390_v57 }
 0x423   : > { %3099 = vmatmul.mubr.bf16.gmra.mrb[40].mxu1 %v4391_v42 }
 0x424   : > { %3102 = vmatprep.mubr.bf16.mxu1 %v4392_v58 }
 0x42b   : > { %3103 = vmatmul.mubr.bf16.gmra.mrb[44].mxu1 %v4393_v21 }
 0x49e   : > { %v3076_v61 = vpop.f32.mrb[16].mxu1 }
 0x49f   : > { %v1530_v56 = vadd.f32 %v3076_v61, %v4089_v62  ;;  %v1521_v44 = vpop.f32.mrb[17].mxu1 }
 0x4a0   : > { %v1522_v49 = vadd.f32 %v1521_v44, %v4089_v62  ;;  %v3077_v54 = vpop.f32.mrb[18].mxu1 }
 0x4a1   : > { %v1533_v45 = vadd.f32 %v3077_v54, %v4089_v62  ;;  %v1524_v51 = vpop.f32.mrb[19].mxu1  ;;  %v1650_v55 = vmax.f32 %v1530_v56, 0.0 }
 0x4a2   : > { %v1525_v40 = vadd.f32 %v1524_v51, %v4089_v62  ;;  %v1648_v23 = vmax.f32 %v1522_v49, 0.0 }
 0x4a3   : > { %v1651_v63 = vmax.f32 %v1533_v45, 0.0 }
 0x4a4   : > { %v1649_v60 = vmax.f32 %v1525_v40, 0.0 }
 0x4a5   : > { %v1681_v22 = vpack.c.bf16 %v1651_v63, %v1650_v55 }
 0x4a6   : > { %v1680_v20 = vpack.c.bf16 %v1649_v60, %v1648_v23 }
 0x4a7   : > { %2541 = vst [vmem:[#allocation2 + $0x88] sm:$0xff] %v1681_v22 }
 0x4a8   : > { %2540 = vst [vmem:[#allocation2 + $0x80] sm:$0xff] %v1680_v20 }
 0x4ae   : > { %v3080_v53 = vpop.f32.mrb[20].mxu1 }
 0x4af   : > { %v1546_v46 = vadd.f32 %v3080_v53, %v4089_v62  ;;  %v1537_v50 = vpop.f32.mrb[21].mxu1 }
 0x4b0   : > { %v1538_v41 = vadd.f32 %v1537_v50, %v4089_v62  ;;  %v3081_v43 = vpop.f32.mrb[22].mxu1 }
 0x4b1   : > { %v1549_v59 = vadd.f32 %v3081_v43, %v4089_v62  ;;  %v1540_v57 = vpop.f32.mrb[23].mxu1  ;;  %v1654_v58 = vmax.f32 %v1546_v46, 0.0 }
 0x4b2   : > { %v1541_v42 = vadd.f32 %v1540_v57, %v4089_v62  ;;  %v1652_v18 = vmax.f32 %v1538_v41, 0.0 }
 0x4b3   : > { %v1655_v21 = vmax.f32 %v1549_v59, 0.0 }
 0x4b4   : > { %v1653_v47 = vmax.f32 %v1541_v42, 0.0 }
 0x4b5   : > { %v1683_v52 = vpack.c.bf16 %v1655_v21, %v1654_v58 }
 0x4b6   : > { %v1682_v61 = vpack.c.bf16 %v1653_v47, %v1652_v18 }
 0x4b7   : > { %2543 = vst [vmem:[#allocation2 + $0x98] sm:$0xff] %v1683_v52 }
 0x4b8   : > { %2542 = vst [vmem:[#allocation2 + $0x90] sm:$0xff] %v1682_v61 }
 0x4be   : > { %v3084_v56 = vpop.f32.mrb[24].mxu1 }
 0x4bf   : > { %v1562_v44 = vadd.f32 %v3084_v56, %v4089_v62  ;;  %v1553_v49 = vpop.f32.mrb[25].mxu1 }
 0x4c0   : > { %v1554_v54 = vadd.f32 %v1553_v49, %v4089_v62  ;;  %v3085_v45 = vpop.f32.mrb[26].mxu1 }
 0x4c1   : > { %v1565_v51 = vadd.f32 %v3085_v45, %v4089_v62  ;;  %v1556_v40 = vpop.f32.mrb[27].mxu1  ;;  %v1658_v63 = vmax.f32 %v1562_v44, 0.0 }
 0x4c2   : > { %v1557_v55 = vadd.f32 %v1556_v40, %v4089_v62  ;;  %v1656_v60 = vmax.f32 %v1554_v54, 0.0 }
 0x4c3   : > { %v1659_v23 = vmax.f32 %v1565_v51, 0.0 }
 0x4c4   : > { %v1657_v22 = vmax.f32 %v1557_v55, 0.0 }
 0x4c5   : > { %v1685_v20 = vpack.c.bf16 %v1659_v23, %v1658_v63 }
 0x4c6   : > { %v1684_v53 = vpack.c.bf16 %v1657_v22, %v1656_v60 }
 0x4c7   : > { %2545 = vst [vmem:[#allocation2 + $0xa8] sm:$0xff] %v1685_v20 }
 0x4c8   : > { %2544 = vst [vmem:[#allocation2 + $0xa0] sm:$0xff] %v1684_v53 }
 0x4ce   : > { %v3088_v46 = vpop.f32.mrb[28].mxu1 }
 0x4cf   : > { %v1578_v50 = vadd.f32 %v3088_v46, %v4089_v62  ;;  %v1569_v41 = vpop.f32.mrb[29].mxu1 }
 0x4d0   : > { %v1570_v43 = vadd.f32 %v1569_v41, %v4089_v62  ;;  %v3089_v59 = vpop.f32.mrb[30].mxu1 }
 0x4d1   : > { %v1581_v57 = vadd.f32 %v3089_v59, %v4089_v62  ;;  %v1572_v42 = vpop.f32.mrb[31].mxu1  ;;  %v1662_v21 = vmax.f32 %v1578_v50, 0.0 }
 0x4d2   : > { %v1573_v58 = vadd.f32 %v1572_v42, %v4089_v62  ;;  %v1660_v47 = vmax.f32 %v1570_v43, 0.0 }
 0x4d3   : > { %v1663_v18 = vmax.f32 %v1581_v57, 0.0 }
 0x4d4   : > { %v1661_v52 = vmax.f32 %v1573_v58, 0.0 }
 0x4d5   : > { %v1687_v61 = vpack.c.bf16 %v1663_v18, %v1662_v21 }
 0x4d6   : > { %v1686_v56 = vpack.c.bf16 %v1661_v52, %v1660_v47 }
 0x4d7   : > { %2547 = vst [vmem:[#allocation2 + $0xb8] sm:$0xff] %v1687_v61 }
 0x4d8   : > { %2546 = vst [vmem:[#allocation2 + $0xb0] sm:$0xff] %v1686_v56 }
 0x4de   : > { %v3092_v44 = vpop.f32.mrb[32].mxu1 }
 0x4df   : > { %v1594_v49 = vadd.f32 %v3092_v44, %v4089_v62  ;;  %v1585_v54 = vpop.f32.mrb[33].mxu1 }
 0x4e0   : > { %v1586_v45 = vadd.f32 %v1585_v54, %v4089_v62  ;;  %v3093_v51 = vpop.f32.mrb[34].mxu1 }
 0x4e1   : > { %v1597_v40 = vadd.f32 %v3093_v51, %v4089_v62  ;;  %v1588_v55 = vpop.f32.mrb[35].mxu1  ;;  %v1666_v23 = vmax.f32 %v1594_v49, 0.0 }
 0x4e2   : > { %v1589_v63 = vadd.f32 %v1588_v55, %v4089_v62  ;;  %v1664_v22 = vmax.f32 %v1586_v45, 0.0 }
 0x4e3   : > { %v1667_v60 = vmax.f32 %v1597_v40, 0.0 }
 0x4e4   : > { %v1665_v20 = vmax.f32 %v1589_v63, 0.0 }
 0x4e5   : > { %v1689_v53 = vpack.c.bf16 %v1667_v60, %v1666_v23 }
 0x4e6   : > { %v1688_v46 = vpack.c.bf16 %v1665_v20, %v1664_v22 }
 0x4e7   : > { %2549 = vst [vmem:[#allocation2 + $0xc8] sm:$0xff] %v1689_v53 }
 0x4e8   : > { %2548 = vst [vmem:[#allocation2 + $0xc0] sm:$0xff] %v1688_v46 }
 0x4ee   : > { %v3096_v50 = vpop.f32.mrb[36].mxu1 }
 0x4ef   : > { %v1610_v41 = vadd.f32 %v3096_v50, %v4089_v62  ;;  %v1601_v43 = vpop.f32.mrb[37].mxu1 }
 0x4f0   : > { %v1602_v59 = vadd.f32 %v1601_v43, %v4089_v62  ;;  %v3097_v57 = vpop.f32.mrb[38].mxu1 }
 0x4f1   : > { %v1613_v42 = vadd.f32 %v3097_v57, %v4089_v62  ;;  %v1604_v58 = vpop.f32.mrb[39].mxu1  ;;  %v1670_v18 = vmax.f32 %v1610_v41, 0.0 }
 0x4f2   : > { %v1605_v21 = vadd.f32 %v1604_v58, %v4089_v62  ;;  %v1668_v52 = vmax.f32 %v1602_v59, 0.0 }
 0x4f3   : > { %v1671_v47 = vmax.f32 %v1613_v42, 0.0 }
 0x4f4   : > { %v1669_v61 = vmax.f32 %v1605_v21, 0.0 }
 0x4f5   : > { %v1691_v56 = vpack.c.bf16 %v1671_v47, %v1670_v18 }
 0x4f6   : > { %v1690_v44 = vpack.c.bf16 %v1669_v61, %v1668_v52  ;;  %v3100_v49 = vpop.f32.mrb[40].mxu1 }
 0x4f7   : > { %2551 = vst [vmem:[#allocation2 + $0xd8] sm:$0xff] %v1691_v56  ;;  %v1626_v54 = vadd.f32 %v3100_v49, %v4089_v62  ;;  %v1617_v45 = vpop.f32.mrb[41].mxu1 }
 0x4f8   : > { %2550 = vst [vmem:[#allocation2 + $0xd0] sm:$0xff] %v1690_v44  ;;  %v1618_v51 = vadd.f32 %v1617_v45, %v4089_v62  ;;  %v3101_v40 = vpop.f32.mrb[42].mxu1 }
 0x4f9   : > { %v1629_v55 = vadd.f32 %v3101_v40, %v4089_v62  ;;  %v1620_v63 = vpop.f32.mrb[43].mxu1  ;;  %v1674_v60 = vmax.f32 %v1626_v54, 0.0 }
 0x4fa   : > { %v1621_v23 = vadd.f32 %v1620_v63, %v4089_v62  ;;  %v1672_v20 = vmax.f32 %v1618_v51, 0.0 }
 0x4fb   : > { %v1675_v22 = vmax.f32 %v1629_v55, 0.0 }
 0x4fc   : > { %v1673_v53 = vmax.f32 %v1621_v23, 0.0 }
 0x4fd   : > { %v1693_v46 = vpack.c.bf16 %v1675_v22, %v1674_v60 }
 0x4fe   : > { %v1692_v50 = vpack.c.bf16 %v1673_v53, %v1672_v20  ;;  %v3104_v41 = vpop.f32.mrb[44].mxu1 }
 0x4ff   : > { %2553 = vst [vmem:[#allocation2 + $0xe8] sm:$0xff] %v1693_v46  ;;  %v1642_v43 = vadd.f32 %v3104_v41, %v4089_v62  ;;  %v1633_v59 = vpop.f32.mrb[45].mxu1 }
 0x500   : > { %2552 = vst [vmem:[#allocation2 + $0xe0] sm:$0xff] %v1692_v50  ;;  %v1634_v57 = vadd.f32 %v1633_v59, %v4089_v62  ;;  %v3105_v42 = vpop.f32.mrb[46].mxu1 }
 0x501   : > { %v1645_v58 = vadd.f32 %v3105_v42, %v4089_v62  ;;  %v1636_v21 = vpop.f32.mrb[47].mxu1  ;;  %v1678_v47 = vmax.f32 %v1642_v43, 0.0 }
 0x502   : > { %v1637_v18 = vadd.f32 %v1636_v21, %v4089_v62  ;;  %v1676_v61 = vmax.f32 %v1634_v57, 0.0 }
 0x503   : > { %v1679_v52 = vmax.f32 %v1645_v58, 0.0 }
 0x504   : > { %v1677_v56 = vmax.f32 %v1637_v18, 0.0 }
 0x505   : > { %v1695_v44 = vpack.c.bf16 %v1679_v52, %v1678_v47 }
 0x506   : > { %v1694_v49 = vpack.c.bf16 %v1677_v56, %v1676_v61 }
 0x507   : > { %2555 = vst [vmem:[#allocation2 + $0xf8] sm:$0xff] %v1695_v44 }
 0x508   : > { %2554 = vst [vmem:[#allocation2 + $0xf0] sm:$0xff] %v1694_v49 }
 0x509 PF: > { %p2556_p3 = scmp.ne.s32.totalorder %s3473_s18, 2 }
 0x50a   : > { %v1730_v54 = vld [vmem:[#allocation2 + $0xc0] sm:$0xff] (!%p2556_p3)  ;;  %v1731_v51 = vld [vmem:[#allocation2 + $0xc8] sm:$0xff] (!%p2556_p3)  ;;  %v2558_v40 = vcombine.high (!%p2556_p3), %v3700_v0, %v3702_v1  ;;  %v1732_v55 = vld [vmem:[#allocation2 + $0xd0] sm:$0xff] (!%p2556_p3)  ;;  %v2582_v63 = vcombine.high (!%p2556_p3), %v3749_v24, %v3751_v25  ;;  %v2557_v42 = vcombine.low (!%p2556_p3), %v3700_v0, %v3702_v1  ;;  %v2589_v58 = vcombine.low (!%p2556_p3), %v3767_v32, %v3770_v33 }
 0x50b   : > { %1720 = sbr.rel (%p2556_p3) target bundleno = 1864 (0x748), region = 60  ;;  %v1722_v45 = vld [vmem:[#allocation2 + $0x80] sm:$0xff] (!%p2556_p3)  ;;  %2874 = vmatprep.subr.bf16.mxu0 (!%p2556_p3), %v1730_v54  ;;  %v1723_v62 = vld [vmem:[#allocation2 + $0x88] sm:$0xff] (!%p2556_p3)  ;;  %3186 = vmatprep.subr.bf16.mxu1 (!%p2556_p3), %v1730_v54  ;;  %v1724_v23 = vld [vmem:[#allocation2 + $0x90] sm:$0xff] (!%p2556_p3)  ;;  %v2560_v21 = vcombine.high (!%p2556_p3), %v3704_v2, %v3706_v3  ;;  %v2581_v18 = vcombine.low (!%p2556_p3), %v3749_v24, %v3751_v25  ;;  %v2584_v47 = vcombine.high (!%p2556_p3), %v3753_v26, %v3756_v27 }
 0x50c   : > { %2875 = vmatpush3.bf16.msra.mxu0 (!%p2556_p3), %v1722_v45  ;;  %1930 = vmatprep.mubr.bf16.mxu0 (!%p2556_p3), %v2558_v40  ;;  %v1733_v60 = vld [vmem:[#allocation2 + $0xd8] sm:$0xff] (!%p2556_p3)  ;;  %v1734_v20 = vld [vmem:[#allocation2 + $0xe0] sm:$0xff] (!%p2556_p3)  ;;  %v1735_v46 = vld [vmem:[#allocation2 + $0xe8] sm:$0xff] (!%p2556_p3)  ;;  %v2590_v0 = vcombine.low (!%p2556_p3), %v3773_v34, %v3776_v35  ;;  %v2559_v1 = vcombine.low (!%p2556_p3), %v3704_v2, %v3706_v3  ;;  %v2591_v24 = vcombine.low (!%p2556_p3), %v3779_v36, %v3782_v37 }
 0x50d   : > { %2876 = vmatprep.subr.bf16.mxu0 (!%p2556_p3), %v1731_v51  ;;  %3194 = vmatpush3.bf16.msra.mxu1 (!%p2556_p3), %v1722_v45  ;;  %v1725_v22 = vld [vmem:[#allocation2 + $0x98] sm:$0xff] (!%p2556_p3)  ;;  %v1726_v53 = vld [vmem:[#allocation2 + $0xa0] sm:$0xff] (!%p2556_p3)  ;;  %v1727_v50 = vld [vmem:[#allocation2 + $0xa8] sm:$0xff] (!%p2556_p3)  ;;  %v2562_v25 = vcombine.high (!%p2556_p3), %v3708_v4, %v3710_v5  ;;  %v2583_v32 = vcombine.low (!%p2556_p3), %v3753_v26, %v3756_v27  ;;  %v2586_v33 = vcombine.high (!%p2556_p3), %v3758_v28, %v3760_v29 }
 0x50e   : > { %3187 = vmatprep.subr.bf16.mxu1 (!%p2556_p3), %v1731_v51  ;;  %2026 = vmatprep.mubr.bf16.mxu1 (!%p2556_p3), %v2582_v63  ;;  %v1728_v43 = vld [vmem:[#allocation2 + $0xb0] sm:$0xff] (!%p2556_p3)  ;;  %v1737_v59 = vld [vmem:[#allocation2 + $0xf8] sm:$0xff] (!%p2556_p3)  ;;  %v2592_v34 = vcombine.low (!%p2556_p3), %v3785_v38, %v3791_v39  ;;  %v2561_v2 = vcombine.low (!%p2556_p3), %v3708_v4, %v3710_v5  ;;  %v2564_v3 = vcombine.high (!%p2556_p3), %v3712_v6, %v3714_v7  ;;  %v4396_v37 = vld [vmem:[#allocation15_spill] sm:$0xff] (!%p2556_p3) }
 0x50f   : > { %v1736_v41 = vld [vmem:[#allocation2 + $0xf0] sm:$0xff] (!%p2556_p3)  ;;  %v1729_v57 = vld [vmem:[#allocation2 + $0xb8] sm:$0xff] (!%p2556_p3)  ;;  %v2585_v26 = vcombine.low (!%p2556_p3), %v3758_v28, %v3760_v29  ;;  %v2588_v27 = vcombine.high (!%p2556_p3), %v3762_v30, %v3764_v31  ;;  %v2563_v35 = vcombine.low (!%p2556_p3), %v3712_v6, %v3714_v7  ;;  %v2566_v4 = vcombine.high (!%p2556_p3), %v3716_v8, %v3718_v9  ;;  %v4401_v56 = vld [vmem:[#allocation22_spill] sm:$0xff] (!%p2556_p3) }
 0x510   : > { %2877 = vmatpush3.bf16.msra.mxu0 (!%p2556_p3), %v1723_v62  ;;  %v2587_v5 = vcombine.low (!%p2556_p3), %v3762_v30, %v3764_v31  ;;  %v2565_v28 = vcombine.low (!%p2556_p3), %v3716_v8, %v3718_v9  ;;  %v2568_v29 = vcombine.high (!%p2556_p3), %v3720_v10, %v3722_v11  ;;  %v2567_v6 = vcombine.low (!%p2556_p3), %v3720_v10, %v3722_v11  ;;  %v4394_v11 = vld [vmem:[#allocation14_spill] sm:$0xff] (!%p2556_p3)  ;;  %v4398_v39 = vld [vmem:[#allocation17_spill] sm:$0xff] (!%p2556_p3)  ;;  %v4403_v54 = vld [vmem:[#allocation24_spill] sm:$0xff] (!%p2556_p3) }
 0x511   : > { %2878 = vmatprep.subr.bf16.mxu0 (!%p2556_p3), %v1732_v55  ;;  %3195 = vmatpush3.bf16.msra.mxu1 (!%p2556_p3), %v1723_v62  ;;  %v2570_v7 = vcombine.high (!%p2556_p3), %v3724_v12, %v3726_v13  ;;  %v2569_v30 = vcombine.low (!%p2556_p3), %v3724_v12, %v3726_v13  ;;  %v2572_v31 = vcombine.high (!%p2556_p3), %v3728_v14, %v3731_v15  ;;  %v4395_v13 = vld [vmem:[#allocation16_spill] sm:$0xff] (!%p2556_p3)  ;;  %v4402_v44 = vld [vmem:[#allocation21_spill] sm:$0xff] (!%p2556_p3)  ;;  %v4404_v45 = vld [vmem:[#allocation23_spill] sm:$0xff] (!%p2556_p3) }
 0x512   : > { %3188 = vmatprep.subr.bf16.mxu1 %v1732_v55  ;;  %v2571_v8 = vcombine.low %v3728_v14, %v3731_v15  ;;  %v2574_v9 = vcombine.high %v3733_v16, %v3735_v17  ;;  %v2573_v10 = vcombine.low %v3733_v16, %v3735_v17  ;;  %v2576_v36 = vcombine.high %v4394_v11, %v3739_v19  ;;  %v4397_v15 = vld [vmem:[#allocation18_spill] sm:$0xff]  ;;  %v4399_v16 = vld [vmem:[#allocation20_spill] sm:$0xff]  ;;  %v4400_v17 = vld [vmem:[#allocation19_spill] sm:$0xff] }
 0x513   : > { %v2575_v12 = vcombine.low %v4394_v11, %v3739_v19  ;;  %v2578_v38 = vcombine.high %v4396_v37, %v4395_v13  ;;  %v2577_v14 = vcombine.low %v4396_v37, %v4395_v13  ;;  %v2580_v52 = vcombine.high %v4398_v39, %v4397_v15  ;;  %v4405_v40 = vld [vmem:[#allocation26_spill] sm:$0xff]  ;;  %v4406_v62 = vld [vmem:[#allocation25_spill] sm:$0xff] }
 0x514   : > { %2879 = vmatpush3.bf16.msra.mxu0 %v1724_v23  ;;  %v2593_v61 = vcombine.low %v4400_v17, %v4399_v16  ;;  %v2579_v19 = vcombine.low %v4398_v39, %v4397_v15  ;;  %v2594_v49 = vcombine.low %v4402_v44, %v4401_v56  ;;  %v2595_v51 = vcombine.low %v4404_v45, %v4403_v54 }
 0x515   : > { %2880 = vmatprep.subr.bf16.mxu0 %v1733_v60  ;;  %3196 = vmatpush3.bf16.msra.mxu1 %v1724_v23  ;;  %v2596_v55 = vcombine.low %v4406_v62, %v4405_v40 }
 0x516   : > { %3189 = vmatprep.subr.bf16.mxu1 %v1733_v60 }
 0x518   : > { %2881 = vmatpush3.bf16.msra.mxu0 %v1725_v22 }
 0x519   : > { %2882 = vmatprep.subr.bf16.mxu0 %v1734_v20  ;;  %3197 = vmatpush3.bf16.msra.mxu1 %v1725_v22 }
 0x51a   : > { %3190 = vmatprep.subr.bf16.mxu1 %v1734_v20 }
 0x51c   : > { %2883 = vmatpush3.bf16.msra.mxu0 %v1726_v53 }
 0x51d   : > { %2884 = vmatprep.subr.bf16.mxu0 %v1735_v46  ;;  %3198 = vmatpush3.bf16.msra.mxu1 %v1726_v53 }
 0x51e   : > { %3191 = vmatprep.subr.bf16.mxu1 %v1735_v46 }
 0x520   : > { %2885 = vmatpush3.bf16.msra.mxu0 %v1727_v50 }
 0x521   : > { %2886 = vmatprep.subr.bf16.mxu0 %v1736_v41  ;;  %3199 = vmatpush3.bf16.msra.mxu1 %v1727_v50 }
 0x522   : > { %3192 = vmatprep.subr.bf16.mxu1 %v1736_v41 }
 0x524   : > { %2887 = vmatpush3.bf16.msra.mxu0 %v1728_v43 }
 0x525   : > { %2888 = vmatprep.subr.bf16.mxu0 %v1737_v59  ;;  %3200 = vmatpush3.bf16.msra.mxu1 %v1728_v43 }
 0x526   : > { %3193 = vmatprep.subr.bf16.mxu1 %v1737_v59 }
 0x528   : > { %2889 = vmatpush3.bf16.msra.mxu0 %v1729_v57 }
 0x529   : > { %3201 = vmatpush3.bf16.msra.mxu1 %v1729_v57 }
 0x52a   : > { %3106 = vmatprep.subr.bf16.mxu1 %v2589_v58 }
 0x52b   : > { %1931 = vmatmul.mubr.bf16.vlgmr.msra.gmra.mrb[0].mxu0 %v2557_v42 }
 0x52c   : > { %1938 = vmatprep.mubr.bf16.mxu0 %v2560_v21  ;;  %2027 = vmatmul.mubr.bf16.vlgmr.msra.gmra.mrb[0].mxu1 %v2581_v18 }
 0x52d   : > { %2034 = vmatprep.mubr.bf16.mxu1 %v2584_v47  ;;  %3107 = vmatpush3.bf16.msra.mxu1 %v2589_v58 }
 0x52e   : > { %3108 = vmatprep.subr.bf16.mxu1 %v2590_v0 }
 0x531   : > { %3109 = vmatpush3.bf16.msra.mxu1 %v2590_v0 }
 0x532   : > { %3110 = vmatprep.subr.bf16.mxu1 %v2591_v24 }
 0x533   : > { %1939 = vmatmul.mubr.bf16.gmra.mrb[4].mxu0 %v2559_v1 }
 0x534   : > { %1946 = vmatprep.mubr.bf16.mxu0 %v2562_v25  ;;  %2035 = vmatmul.mubr.bf16.gmra.mrb[4].mxu1 %v2583_v32 }
 0x535   : > { %2042 = vmatprep.mubr.bf16.mxu1 %v2586_v33  ;;  %3111 = vmatpush3.bf16.msra.mxu1 %v2591_v24 }
 0x536   : > { %3112 = vmatprep.subr.bf16.mxu1 %v2592_v34 }
 0x539   : > { %3113 = vmatpush3.bf16.msra.mxu1 %v2592_v34 }
 0x53a   : > { %3114 = vmatprep.subr.bf16.mxu1 %v2593_v61 }
 0x53b   : > { %1947 = vmatmul.mubr.bf16.gmra.mrb[8].mxu0 %v2561_v2 }
 0x53c   : > { %1954 = vmatprep.mubr.bf16.mxu0 %v2564_v3  ;;  %2043 = vmatmul.mubr.bf16.gmra.mrb[8].mxu1 %v2585_v26 }
 0x53d   : > { %2050 = vmatprep.mubr.bf16.mxu1 %v2588_v27  ;;  %3115 = vmatpush3.bf16.msra.mxu1 %v2593_v61 }
 0x53e   : > { %3116 = vmatprep.subr.bf16.mxu1 %v2594_v49 }
 0x541   : > { %3117 = vmatpush3.bf16.msra.mxu1 %v2594_v49 }
 0x542   : > { %3118 = vmatprep.subr.bf16.mxu1 %v2595_v51 }
 0x543   : > { %1955 = vmatmul.mubr.bf16.gmra.mrb[12].mxu0 %v2563_v35 }
 0x544   : > { %1962 = vmatprep.mubr.bf16.mxu0 %v2566_v4  ;;  %2051 = vmatmul.mubr.bf16.gmra.mrb[12].mxu1 %v2587_v5 }
 0x545   : > { %3119 = vmatpush3.bf16.msra.mxu1 %v2595_v51 }
 0x546   : > { %3120 = vmatprep.subr.bf16.mxu1 %v2596_v55 }
 0x549   : > { %3121 = vmatpush3.bf16.msra.mxu1 %v2596_v55 }
 0x54b   : > { %1963 = vmatmul.mubr.bf16.gmra.mrb[16].mxu0 %v2565_v28 }
 0x54c   : > { %1970 = vmatprep.mubr.bf16.mxu0 %v2568_v29 }
 0x553   : > { %1971 = vmatmul.mubr.bf16.gmra.mrb[20].mxu0 %v2567_v6 }
 0x554   : > { %1978 = vmatprep.mubr.bf16.mxu0 %v2570_v7 }
 0x55b   : > { %1979 = vmatmul.mubr.bf16.gmra.mrb[24].mxu0 %v2569_v30 }
 0x55c   : > { %1986 = vmatprep.mubr.bf16.mxu0 %v2572_v31 }
 0x563   : > { %1987 = vmatmul.mubr.bf16.gmra.mrb[28].mxu0 %v2571_v8 }
 0x564   : > { %1994 = vmatprep.mubr.bf16.mxu0 %v2574_v9 }
 0x56b   : > { %1995 = vmatmul.mubr.bf16.gmra.mrb[32].mxu0 %v2573_v10 }
 0x56c   : > { %2002 = vmatprep.mubr.bf16.mxu0 %v2576_v36 }
 0x573   : > { %2003 = vmatmul.mubr.bf16.gmra.mrb[36].mxu0 %v2575_v12 }
 0x574   : > { %2010 = vmatprep.mubr.bf16.mxu0 %v2578_v38 }
 0x57b   : > { %2011 = vmatmul.mubr.bf16.gmra.mrb[40].mxu0 %v2577_v14 }
 0x57c   : > { %2018 = vmatprep.mubr.bf16.mxu0 %v2580_v52 }
 0x583   : > { %2019 = vmatmul.mubr.bf16.gmra.mrb[44].mxu0 %v2579_v19 }
 0x5fe   : > { %v2890_v63 = vpop.f32.mrb[0].mxu0 }
 0x5ff   : > { %v2891_v23 = vpop.f32.mrb[1].mxu0  ;;  %v2962_v20 = vpop.f32.mrb[0].mxu1 }
 0x600   : > { %v2892_v60 = vadd.f32 %v2891_v23, %v2890_v63  ;;  %v2893_v22 = vpop.f32.mrb[2].mxu0  ;;  %v2963_v46 = vpop.f32.mrb[1].mxu1 }
 0x601   : > { %v2894_v53 = vpop.f32.mrb[3].mxu0  ;;  %v4204_v41 = vadd.f32 %v2963_v46, %v2962_v20  ;;  %v2965_v43 = vpop.f32.mrb[2].mxu1 }
 0x602   : > { %v2895_v50 = vadd.f32 %v2894_v53, %v2893_v22  ;;  %v2966_v59 = vpop.f32.mrb[3].mxu1 }
 0x603   : > { %v4206_v42 = vadd.f32 %v2966_v59, %v2965_v43 }
 0x604   : > { %v2059_v57 = vpack.c.bf16 %v2895_v50, %v2892_v60 }
 0x605   : > { %v2071_v21 = vpack.c.bf16 %v4206_v42, %v4204_v41 }
 0x606   : > { %v2896_v58 = vpop.f32.mrb[4].mxu0  ;;  %3122 = vmatprep.mubr.bf16.mxu1 %v2059_v57 }
 0x607   : > { %v2897_v18 = vpop.f32.mrb[5].mxu0  ;;  %v2968_v1 = vpop.f32.mrb[4].mxu1 }
 0x608   : > { %v2898_v47 = vadd.f32 %v2897_v18, %v2896_v58  ;;  %v2899_v0 = vpop.f32.mrb[6].mxu0  ;;  %v2969_v25 = vpop.f32.mrb[5].mxu1 }
 0x609   : > { %v2900_v24 = vpop.f32.mrb[7].mxu0  ;;  %v4210_v33 = vadd.f32 %v2969_v25, %v2968_v1  ;;  %v2971_v34 = vpop.f32.mrb[6].mxu1 }
 0x60a   : > { %v2901_v32 = vadd.f32 %v2900_v24, %v2899_v0  ;;  %v2972_v2 = vpop.f32.mrb[7].mxu1 }
 0x60b   : > { %v4212_v26 = vadd.f32 %v2972_v2, %v2971_v34 }
 0x60c   : > { %v2060_v3 = vpack.c.bf16 %v2901_v32, %v2898_v47 }
 0x60d   : > { %v2072_v35 = vpack.c.bf16 %v4212_v26, %v4210_v33 }
 0x60e   : > { %v2902_v27 = vpop.f32.mrb[8].mxu0  ;;  %3123 = vmatmul.mubr.bf16.vlgmr.msra.gmra.mrb[16].mxu1 %v2060_v3 }
 0x60f   : > { %v2903_v4 = vpop.f32.mrb[9].mxu0  ;;  %v2974_v29 = vpop.f32.mrb[8].mxu1 }
 0x610   : > { %v2904_v5 = vadd.f32 %v2903_v4, %v2902_v27  ;;  %v2905_v28 = vpop.f32.mrb[10].mxu0  ;;  %v2975_v7 = vpop.f32.mrb[9].mxu1 }
 0x611   : > { %v2906_v6 = vpop.f32.mrb[11].mxu0  ;;  %v4216_v31 = vadd.f32 %v2975_v7, %v2974_v29  ;;  %v2977_v8 = vpop.f32.mrb[10].mxu1 }
 0x612   : > { %v2907_v30 = vadd.f32 %v2906_v6, %v2905_v28  ;;  %v2978_v9 = vpop.f32.mrb[11].mxu1 }
 0x613   : > { %v4218_v11 = vadd.f32 %v2978_v9, %v2977_v8 }
 0x614   : > { %v2061_v10 = vpack.c.bf16 %v2907_v30, %v2904_v5 }
 0x615   : > { %v2073_v12 = vpack.c.bf16 %v4218_v11, %v4216_v31 }
 0x616   : > { %v2908_v36 = vpop.f32.mrb[12].mxu0  ;;  %3126 = vmatprep.mubr.bf16.mxu1 %v2061_v10 }
 0x617   : > { %v2909_v13 = vpop.f32.mrb[13].mxu0  ;;  %v2980_v14 = vpop.f32.mrb[12].mxu1 }
 0x618   : > { %v2910_v37 = vadd.f32 %v2909_v13, %v2908_v36  ;;  %v2911_v38 = vpop.f32.mrb[14].mxu0  ;;  %v2981_v39 = vpop.f32.mrb[13].mxu1 }
 0x619   : > { %v2912_v15 = vpop.f32.mrb[15].mxu0  ;;  %v4222_v16 = vadd.f32 %v2981_v39, %v2980_v14  ;;  %v2983_v17 = vpop.f32.mrb[14].mxu1 }
 0x61a   : > { %v2913_v52 = vadd.f32 %v2912_v15, %v2911_v38  ;;  %v2984_v61 = vpop.f32.mrb[15].mxu1 }
 0x61b   : > { %v4224_v56 = vadd.f32 %v2984_v61, %v2983_v17 }
 0x61c   : > { %v2062_v19 = vpack.c.bf16 %v2913_v52, %v2910_v37 }
 0x61d   : > { %v2074_v49 = vpack.c.bf16 %v4224_v56, %v4222_v16 }
 0x61e   : > { %v2914_v44 = vpop.f32.mrb[16].mxu0  ;;  %3127 = vmatmul.mubr.bf16.gmra.mrb[20].mxu1 %v2062_v19 }
 0x61f   : > { %v2915_v54 = vpop.f32.mrb[17].mxu0 }
 0x620   : > { %v2916_v45 = vadd.f32 %v2915_v54, %v2914_v44  ;;  %v2917_v51 = vpop.f32.mrb[18].mxu0 }
 0x621   : > { %v2918_v40 = vpop.f32.mrb[19].mxu0 }
 0x622   : > { %v2919_v62 = vadd.f32 %v2918_v40, %v2917_v51 }
 0x624   : > { %v2063_v55 = vpack.c.bf16 %v2919_v62, %v2916_v45  ;;  %v2076_v62 = vlaneseq }
 0x626   : > { %v2920_v63 = vpop.f32.mrb[20].mxu0  ;;  %3130 = vmatprep.mubr.bf16.mxu1 %v2063_v55  ;;  %v2077_v55 = vshrl.u32 %v2076_v62, 7 }
 0x627   : > { %v2921_v23 = vpop.f32.mrb[21].mxu0 }
 0x628   : > { %v2922_v60 = vadd.f32 %v2921_v23, %v2920_v63  ;;  %v2923_v22 = vpop.f32.mrb[22].mxu0  ;;  %v2078_v63 = vsub.s32 0, %v2077_v55 }
 0x629   : > { %v2924_v20 = vpop.f32.mrb[23].mxu0 }
 0x62a   : > { %v2925_v53 = vadd.f32 %v2924_v20, %v2923_v22  ;;  %v4241_v23 = vrot.slane %v3817_v48, %v2078_v63 }
 0x62c   : > { %v2064_v46 = vpack.c.bf16 %v2925_v53, %v2922_v60 }
 0x62e   : > { %v2926_v50 = vpop.f32.mrb[24].mxu0  ;;  %3131 = vmatmul.mubr.bf16.gmra.mrb[24].mxu1 %v2064_v46 }
 0x62f   : > { %v2927_v43 = vpop.f32.mrb[25].mxu0 }
 0x630   : > { %v2928_v59 = vadd.f32 %v2927_v43, %v2926_v50  ;;  %v2929_v57 = vpop.f32.mrb[26].mxu0 }
 0x631   : > { %v2930_v58 = vpop.f32.mrb[27].mxu0 }
 0x632   : > { %v2931_v18 = vadd.f32 %v2930_v58, %v2929_v57 }
 0x634   : > { %v2065_v47 = vpack.c.bf16 %v2931_v18, %v2928_v59 }
 0x636   : > { %v2932_v0 = vpop.f32.mrb[28].mxu0  ;;  %3134 = vmatprep.mubr.bf16.mxu1 %v2065_v47 }
 0x637   : > { %v2933_v1 = vpop.f32.mrb[29].mxu0 }
 0x638   : > { %v2934_v24 = vadd.f32 %v2933_v1, %v2932_v0  ;;  %v2935_v25 = vpop.f32.mrb[30].mxu0 }
 0x639   : > { %v2936_v32 = vpop.f32.mrb[31].mxu0 }
 0x63a   : > { %v2937_v34 = vadd.f32 %v2936_v32, %v2935_v25 }
 0x63c   : > { %v2066_v2 = vpack.c.bf16 %v2937_v34, %v2934_v24 }
 0x63e   : > { %v2938_v3 = vpop.f32.mrb[32].mxu0  ;;  %3135 = vmatmul.mubr.bf16.gmra.mrb[28].mxu1 %v2066_v2 }
 0x63f   : > { %v2939_v27 = vpop.f32.mrb[33].mxu0 }
 0x640   : > { %v2940_v4 = vadd.f32 %v2939_v27, %v2938_v3  ;;  %v2941_v5 = vpop.f32.mrb[34].mxu0 }
 0x641   : > { %v2942_v28 = vpop.f32.mrb[35].mxu0 }
 0x642   : > { %v2943_v29 = vadd.f32 %v2942_v28, %v2941_v5 }
 0x644   : > { %v2067_v6 = vpack.c.bf16 %v2943_v29, %v2940_v4 }
 0x646   : > { %v2944_v7 = vpop.f32.mrb[36].mxu0  ;;  %3138 = vmatprep.mubr.bf16.mxu1 %v2067_v6 }
 0x647   : > { %v2945_v30 = vpop.f32.mrb[37].mxu0 }
 0x648   : > { %v2946_v8 = vadd.f32 %v2945_v30, %v2944_v7  ;;  %v2947_v9 = vpop.f32.mrb[38].mxu0 }
 0x649   : > { %v2948_v10 = vpop.f32.mrb[39].mxu0 }
 0x64a   : > { %v2949_v36 = vadd.f32 %v2948_v10, %v2947_v9 }
 0x64c   : > { %v2068_v13 = vpack.c.bf16 %v2949_v36, %v2946_v8 }
 0x64e   : > { %v2950_v37 = vpop.f32.mrb[40].mxu0  ;;  %3139 = vmatmul.mubr.bf16.gmra.mrb[32].mxu1 %v2068_v13 }
 0x64f   : > { %v2951_v38 = vpop.f32.mrb[41].mxu0 }
 0x650   : > { %v2952_v14 = vadd.f32 %v2951_v38, %v2950_v37  ;;  %v2953_v15 = vpop.f32.mrb[42].mxu0 }
 0x651   : > { %v2954_v39 = vpop.f32.mrb[43].mxu0 }
 0x652   : > { %v2955_v52 = vadd.f32 %v2954_v39, %v2953_v15 }
 0x654   : > { %v2069_v17 = vpack.c.bf16 %v2955_v52, %v2952_v14 }
 0x656   : > { %v2956_v61 = vpop.f32.mrb[44].mxu0  ;;  %3142 = vmatprep.mubr.bf16.mxu1 %v2069_v17 }
 0x657   : > { %v2957_v19 = vpop.f32.mrb[45].mxu0 }
 0x658   : > { %v2958_v44 = vadd.f32 %v2957_v19, %v2956_v61  ;;  %v2959_v54 = vpop.f32.mrb[46].mxu0 }
 0x659   : > { %v2960_v45 = vpop.f32.mrb[47].mxu0 }
 0x65a   : > { %v2961_v51 = vadd.f32 %v2960_v45, %v2959_v54 }
 0x65c   : > { %v2070_v40 = vpack.c.bf16 %v2961_v51, %v2958_v44 }
 0x65e   : > { %3143 = vmatmul.mubr.bf16.gmra.mrb[36].mxu1 %v2070_v40 }
 0x65f   : > { %3146 = vmatprep.mubr.bf16.mxu1 %v2071_v21 }
 0x666   : > { %3147 = vmatmul.mubr.bf16.gmra.mrb[40].mxu1 %v2072_v35 }
 0x667   : > { %3150 = vmatprep.mubr.bf16.mxu1 %v2073_v12 }
 0x66e   : > { %3151 = vmatmul.mubr.bf16.gmra.mrb[44].mxu1 %v2074_v49 }
 0x6e1   : > { %v3124_v41 = vpop.f32.mrb[16].mxu1 }
 0x6e2   : > { %v2172_v42 = vadd.f32 %v3124_v41, %v4241_v23  ;;  %v2163_v21 = vpop.f32.mrb[17].mxu1 }
 0x6e3   : > { %v2164_v33 = vadd.f32 %v2163_v21, %v4241_v23  ;;  %v3125_v26 = vpop.f32.mrb[18].mxu1 }
 0x6e4   : > { %2292 = vst [vmem:[#allocation9 + $0x10] sm:$0xff] %v2172_v42  ;;  %v2175_v35 = vadd.f32 %v3125_v26, %v4241_v23  ;;  %v2166_v31 = vpop.f32.mrb[19].mxu1 }
 0x6e5   : > { %2290 = vst [vmem:[#allocation9] sm:$0xff] %v2164_v33  ;;  %v2167_v11 = vadd.f32 %v2166_v31, %v4241_v23 }
 0x6e6   : > { %2293 = vst [vmem:[#allocation9 + $0x18] sm:$0xff] %v2175_v35 }
 0x6e7   : > { %2291 = vst [vmem:[#allocation9 + $0x8] sm:$0xff] %v2167_v11 }
 0x6f1   : > { %v3128_v12 = vpop.f32.mrb[20].mxu1 }
 0x6f2   : > { %v2188_v48 = vadd.f32 %v3128_v12, %v4241_v23  ;;  %v2179_v16 = vpop.f32.mrb[21].mxu1 }
 0x6f3   : > { %v2180_v56 = vadd.f32 %v2179_v16, %v4241_v23  ;;  %v3129_v49 = vpop.f32.mrb[22].mxu1 }
 0x6f4   : > { %2296 = vst [vmem:[#allocation9 + $0x30] sm:$0xff] %v2188_v48  ;;  %v2191_v60 = vadd.f32 %v3129_v49, %v4241_v23  ;;  %v2182_v22 = vpop.f32.mrb[23].mxu1 }
 0x6f5   : > { %2294 = vst [vmem:[#allocation9 + $0x20] sm:$0xff] %v2180_v56  ;;  %v2183_v20 = vadd.f32 %v2182_v22, %v4241_v23 }
 0x6f6   : > { %2297 = vst [vmem:[#allocation9 + $0x38] sm:$0xff] %v2191_v60 }
 0x6f7   : > { %2295 = vst [vmem:[#allocation9 + $0x28] sm:$0xff] %v2183_v20 }
 0x701   : > { %v3132_v53 = vpop.f32.mrb[24].mxu1 }
 0x702   : > { %v2204_v46 = vadd.f32 %v3132_v53, %v4241_v23  ;;  %v2195_v50 = vpop.f32.mrb[25].mxu1 }
 0x703   : > { %v2196_v43 = vadd.f32 %v2195_v50, %v4241_v23  ;;  %v3133_v59 = vpop.f32.mrb[26].mxu1 }
 0x704   : > { %2300 = vst [vmem:[#allocation9 + $0x50] sm:$0xff] %v2204_v46  ;;  %v2207_v57 = vadd.f32 %v3133_v59, %v4241_v23  ;;  %v2198_v58 = vpop.f32.mrb[27].mxu1 }
 0x705   : > { %2298 = vst [vmem:[#allocation9 + $0x40] sm:$0xff] %v2196_v43  ;;  %v2199_v18 = vadd.f32 %v2198_v58, %v4241_v23 }
 0x706   : > { %2301 = vst [vmem:[#allocation9 + $0x58] sm:$0xff] %v2207_v57 }
 0x707   : > { %2299 = vst [vmem:[#allocation9 + $0x48] sm:$0xff] %v2199_v18 }
 0x711   : > { %v3136_v47 = vpop.f32.mrb[28].mxu1 }
 0x712   : > { %v2220_v0 = vadd.f32 %v3136_v47, %v4241_v23  ;;  %v2211_v1 = vpop.f32.mrb[29].mxu1 }
 0x713   : > { %v2212_v24 = vadd.f32 %v2211_v1, %v4241_v23  ;;  %v3137_v25 = vpop.f32.mrb[30].mxu1 }
 0x714   : > { %2304 = vst [vmem:[#allocation9 + $0x70] sm:$0xff] %v2220_v0  ;;  %v2223_v32 = vadd.f32 %v3137_v25, %v4241_v23  ;;  %v2214_v34 = vpop.f32.mrb[31].mxu1 }
 0x715   : > { %2302 = vst [vmem:[#allocation9 + $0x60] sm:$0xff] %v2212_v24  ;;  %v2215_v2 = vadd.f32 %v2214_v34, %v4241_v23 }
 0x716   : > { %2305 = vst [vmem:[#allocation9 + $0x78] sm:$0xff] %v2223_v32 }
 0x717   : > { %2303 = vst [vmem:[#allocation9 + $0x68] sm:$0xff] %v2215_v2 }
 0x721   : > { %v3140_v3 = vpop.f32.mrb[32].mxu1 }
 0x722   : > { %v2236_v27 = vadd.f32 %v3140_v3, %v4241_v23  ;;  %v2227_v4 = vpop.f32.mrb[33].mxu1 }
 0x723   : > { %v2228_v5 = vadd.f32 %v2227_v4, %v4241_v23  ;;  %v3141_v28 = vpop.f32.mrb[34].mxu1 }
 0x724   : > { %2308 = vst [vmem:[#allocation9 + $0x90] sm:$0xff] %v2236_v27  ;;  %v2239_v29 = vadd.f32 %v3141_v28, %v4241_v23  ;;  %v2230_v6 = vpop.f32.mrb[35].mxu1 }
 0x725   : > { %2306 = vst [vmem:[#allocation9 + $0x80] sm:$0xff] %v2228_v5  ;;  %v2231_v7 = vadd.f32 %v2230_v6, %v4241_v23 }
 0x726   : > { %2309 = vst [vmem:[#allocation9 + $0x98] sm:$0xff] %v2239_v29 }
 0x727   : > { %2307 = vst [vmem:[#allocation9 + $0x88] sm:$0xff] %v2231_v7 }
 0x731   : > { %v3144_v30 = vpop.f32.mrb[36].mxu1 }
 0x732   : > { %v2252_v8 = vadd.f32 %v3144_v30, %v4241_v23  ;;  %v2243_v9 = vpop.f32.mrb[37].mxu1 }
 0x733   : > { %v2244_v10 = vadd.f32 %v2243_v9, %v4241_v23  ;;  %v3145_v36 = vpop.f32.mrb[38].mxu1 }
 0x734   : > { %2312 = vst [vmem:[#allocation9 + $0xb0] sm:$0xff] %v2252_v8  ;;  %v2255_v13 = vadd.f32 %v3145_v36, %v4241_v23  ;;  %v2246_v37 = vpop.f32.mrb[39].mxu1 }
 0x735   : > { %2310 = vst [vmem:[#allocation9 + $0xa0] sm:$0xff] %v2244_v10  ;;  %v2247_v38 = vadd.f32 %v2246_v37, %v4241_v23 }
 0x736   : > { %2313 = vst [vmem:[#allocation9 + $0xb8] sm:$0xff] %v2255_v13 }
 0x737   : > { %2311 = vst [vmem:[#allocation9 + $0xa8] sm:$0xff] %v2247_v38 }
 0x739   : > { %v3148_v14 = vpop.f32.mrb[40].mxu1 }
 0x73a   : > { %v2268_v15 = vadd.f32 %v3148_v14, %v4241_v23  ;;  %v2259_v39 = vpop.f32.mrb[41].mxu1 }
 0x73b   : > { %v2260_v52 = vadd.f32 %v2259_v39, %v4241_v23  ;;  %v3149_v17 = vpop.f32.mrb[42].mxu1 }
 0x73c   : > { %2316 = vst [vmem:[#allocation9 + $0xd0] sm:$0xff] %v2268_v15  ;;  %v2271_v61 = vadd.f32 %v3149_v17, %v4241_v23  ;;  %v2262_v19 = vpop.f32.mrb[43].mxu1 }
 0x73d   : > { %2314 = vst [vmem:[#allocation9 + $0xc0] sm:$0xff] %v2260_v52  ;;  %v2263_v44 = vadd.f32 %v2262_v19, %v4241_v23 }
 0x73e   : > { %2317 = vst [vmem:[#allocation9 + $0xd8] sm:$0xff] %v2271_v61 }
 0x73f   : > { %2315 = vst [vmem:[#allocation9 + $0xc8] sm:$0xff] %v2263_v44 }
 0x741   : > { %v3152_v54 = vpop.f32.mrb[44].mxu1 }
 0x742   : > { %v2284_v45 = vadd.f32 %v3152_v54, %v4241_v23  ;;  %v2275_v51 = vpop.f32.mrb[45].mxu1 }
 0x743   : > { %v2276_v40 = vadd.f32 %v2275_v51, %v4241_v23  ;;  %v3153_v62 = vpop.f32.mrb[46].mxu1 }
 0x744   : > { %2320 = vst [vmem:[#allocation9 + $0xf0] sm:$0xff] %v2284_v45  ;;  %v2287_v55 = vadd.f32 %v3153_v62, %v4241_v23  ;;  %v2278_v63 = vpop.f32.mrb[47].mxu1 }
 0x745   : > { %2318 = vst [vmem:[#allocation9 + $0xe0] sm:$0xff] %v2276_v40  ;;  %v2279_v41 = vadd.f32 %v2278_v63, %v4241_v23 }
 0x746   : > { %2321 = vst [vmem:[#allocation9 + $0xf8] sm:$0xff] %v2287_v55 }
 0x747   : > { %2319 = vst [vmem:[#allocation9 + $0xe8] sm:$0xff] %v2279_v41 }
 0x748 PF: > { %p3232_p12 = scmp.eq.s32.totalorder %s3547_s21, 2  ;;  %s3490_s18 = smov [#allocation9]  }
 0x749   : > { %s2331_s10 = sshll.u32 %s3490_s18, 4  ;;  %s2332_s10 = int_to_ptr.vmem [resolvable:$true] %s2331_s10 }
 0x74a   : > { %s3393_s29 = scalar_lea.vmem %s2332_s10, 4096  ;;  %p3400_p8 = scmp.lt.s32.totalorder %s2332_s10, %s2332_s10 }
 0x74b   : > { %p3394_p1 = scmp.ne.s32.totalorder %s2332_s10, %s3393_s29  ;;  %p3401_p13 = scmp.lt.s32.totalorder %s3393_s29, %s3393_s29 }
 0x74d   : > { %p3395_p2 = pnand %p3394_p1, %p3232_p12  ;;  %p3402_p5 = por %p3401_p13, %p3400_p8 }
 0x74f   : > { %p3396_p4 = pneg %p3395_p2 }
 0x751   : > { %p3403_p6 = pnand %p3402_p5, %p3396_p4 }
 0x753   : > { %3406 = shalt.err (!%p3403_p6)
}
 0x754   : > { %s3407_s26 = scalar_lea.hbm %s4320_s4, 4096 }
 0x755   : > { %p3408_p9 = scmp.ne.s32.totalorder %s4320_s4, %s3407_s26  ;;  %p3413_p11 = scmp.lt.u32.totalorder %s3407_s26, %s4320_s4 }
 0x757   : > { %p3409_p10 = pnand %p3408_p9, %p3232_p12 }
 0x759   : > { %p3410_p7 = pneg %p3409_p10 }
 0x75b   : > { %p3415_p0 = pnand %p3413_p11, %p3410_p7 }
 0x75d   : > { %3418 = shalt.err (!%p3415_p0)
}
 0x75e   : > { %s3491_s27 = smov 128   ;;  %s3492_s8 = smov 8  }
 0x75f   : > { %3213 = dma.vmem_to_hbm [thread:$0]  (%p3232_p12), %s2332_s10, 4096, %s4320_s4, [#allocation5], %s3491_s27, %s3491_s27, %s3492_s8  }
 0x760   : > { %3456 = dma.done.wait (%p3232_p12), [#allocation5], 4096  }
 0x761   : > { %3458 = vsyncadd (%p3232_p12), [#allocation5], 4294963200 }
 0x762 PF: > { %s17_s20 = sadd.s32 1, %s3481_s20   ;;  %s4407_s15 = smov %s3465_s16 }
 0x763   : > { %p14_p3 = scmp.ge.s32.totalorder %s17_s20, 5   ;;  %s4408_s16 = smov %s3469_s17 }
 0x764   : > { %s4409_s17 = smov %s3680_s11  ;;  %s4410_s18 = smov %s3477_s19 }
 0x765   : > { %s4411_s19 = smov %s4413_s14  ;;  %16 = sbr.rel (!%p14_p3) target bundleno = 5 (0x5), region = 100 }
 0x76c   :  { %2347 = vsyncpa [#allocation4], 1 }
 0x76d   :  { %2349 = vsyncpa [#allocation4 + $0x1], 1 }
 0x76e   :  { %2350 = vsyncpa [#allocation7], 1 }
 0x76f   :  { %2351 = vsyncpa [#allocation5], 1 }
 0x770   :  { %2353 = vsyncpa [#allocation5 + $0x1], 1 }

</bundles_post_ra>
